<compile_context>
chip_gen: v6e
topology: v6e:2x2x1
jax: 0.10.0
libtpu: 0.0.40
codegen_flags: <defaults>
</compile_context>

<pallas_src>
import functools

import jax
import jax.numpy as jnp
from jax.experimental import pallas as pl
from jax.experimental.pallas import tpu as pltpu

KSIZE = 3  # kernel_size


def _wsconv_kernel(x_ref, w_ref, b_ref, o_ref, *, bn, Hp, H, W, Wpa, Cin, Cout):
    # x_ref : (bn, Hp, Wpa, Cin)   zero-padded NHWC block (bn batch images)
    # w_ref : (KH, Cin, KW*Cout)   pre-scaled weights, kw taps concatenated on out dim
    # b_ref : (1, Cout)
    # o_ref : (bn, H, W*Cout)      lane-dense output slab

    # One clean (copy-free) flatten of the whole padded block onto the matmul M axis:
    # minor dim Cin stays put, Wpa is a multiple of 8 so the merge is sublane-clean.
    xp = x_ref[...].reshape(bn * Hp * Wpa, Cin)

    # One MXU dot per kh tap (K = Cin, N = 3*Cout, f32 accumulation).  The kh shift is
    # applied as a free major-axis slice when summing into r_sum, so the strided
    # kw-combine below runs ONCE on the summed slab instead of once per kh.
    r = [
        jnp.dot(xp, w_ref[kh], preferred_element_type=jnp.float32)
        .reshape(bn, Hp, Wpa, KSIZE * Cout)
        for kh in range(KSIZE)
    ]
    r_sum = r[0][:, 0:H] + r[1][:, 1:H + 1] + r[2][:, 2:H + 2]  # (bn, H, Wpa, 3*Cout)

    # Combine the three kw-shifted result columns; bias is fused into the first add
    # (no separate zero-init or full-tile bias pass).
    b = b_ref[...].astype(jnp.float32).reshape(1, 1, 1, Cout)
    acc = b + r_sum[:, :, 0:W, 0:Cout]
    for kw in range(1, KSIZE):
        acc = acc + r_sum[:, :, kw:kw + W, kw * Cout:(kw + 1) * Cout]

    # Cast before the lane-merging reshape (halves relayout bytes for bf16 outputs),
    # then store the lane-dense (W*Cout) slab with full-lane vst.
    o_ref[...] = acc.astype(o_ref.dtype).reshape(bn, H, W * Cout)


def wsconv2d(x_nchw, weight_oihw, bias, *, gain=2, block_n=None, compute_dtype=None):
    """x_nchw: (N, Cin, H, W). weight_oihw: (Cout, Cin, 3, 3). bias: (Cout,)."""
    N, Cin, H, W = x_nchw.shape
    Cout = weight_oihw.shape[0]
    scale = float((gain / (Cin * KSIZE ** 2)) ** 0.5)

    # Batch blocking: amortize per-step pipeline overhead while keeping >= 2 grid
    # steps when possible so both v7x TensorCores are used (v5e/v6e unaffected).
    if block_n is None:
        block_n = 1
        for cand in range(N // 2, 0, -1):
            if N % cand == 0:
                block_n = cand
                break
    assert N % block_n == 0, "block_n must divide N"

    # Glue (layout only): NCHW -> NHWC and zero pad (pad=1).  Width is rounded up to
    # a multiple of 8 so the (.., Wpa, Cin) merge onto the matmul M axis is
    # sublane-clean; the extra zero columns are never read by the kw slices.
    # TODO(synk): at W=16 this leaves 6/24 dead columns (~25% of M); for production
    # pick band widths with W+2 near a multiple of 8, or im2col to K=9*Cin.
    Hp = H + 2
    Wpa = ((W + 2 + 7) // 8) * 8
    x_nhwc = jnp.transpose(x_nchw, (0, 2, 3, 1))                      # (N, H, W, Cin)
    x_pad = jnp.pad(x_nhwc, ((0, 0), (1, 1), (1, Wpa - W - 1), (0, 0)))

    # Fold the equalized-LR scale into the weights in f32 (conv(x*s, W) == conv(x, s*W))
    # and regroup to (KH, Cin, KW*Cout) so each kh tap is a single wide matmul.
    w_hwio = jnp.transpose(weight_oihw, (2, 3, 1, 0)).astype(jnp.float32) * scale
    w_k = jnp.transpose(w_hwio, (0, 2, 1, 3)).reshape(KSIZE, Cin, KSIZE * Cout)
    b2d = bias.reshape(1, Cout)

    if compute_dtype is not None:
        # bf16 activations/weights: 2x MXU rate, half the DMA bytes/VMEM footprint;
        # accumulation stays f32 via preferred_element_type (scale folded in f32 above).
        x_pad = x_pad.astype(compute_dtype)
        w_k = w_k.astype(compute_dtype)
    else:
        w_k = w_k.astype(x_pad.dtype)

    kernel = functools.partial(
        _wsconv_kernel, bn=block_n, Hp=Hp, H=H, W=W, Wpa=Wpa, Cin=Cin, Cout=Cout)

    out = pl.pallas_call(
        kernel,
        out_shape=jax.ShapeDtypeStruct((N, H, W * Cout), x_nchw.dtype),
        grid_spec=pltpu.PrefetchScalarGridSpec(
            num_scalar_prefetch=0,
            grid=(N // block_n,),
            in_specs=[
                pl.BlockSpec((block_n, Hp, Wpa, Cin), lambda n: (n, 0, 0, 0)),
                pl.BlockSpec((KSIZE, Cin, KSIZE * Cout), lambda n: (0, 0, 0)),
                pl.BlockSpec((1, Cout), lambda n: (0, 0)),
            ],
            out_specs=pl.BlockSpec((block_n, H, W * Cout), lambda n: (n, 0, 0)),
        ),
        compiler_params=pltpu.CompilerParams(
            dimension_semantics=("parallel",)),
    )(x_pad, w_k, b2d)

    # Back to PyTorch's NCHW convention.
    return jnp.transpose(out.reshape(N, H, W, Cout), (0, 3, 1, 2))


def _reference(x_nchw, weight_oihw, bias, *, gain=2):
    Cin = x_nchw.shape[1]
    scale = (gain / (Cin * KSIZE ** 2)) ** 0.5
    y = jax.lax.conv_general_dilated(
        x_nchw * scale, weight_oihw,
        window_strides=(1, 1), padding=((1, 1), (1, 1)),
        dimension_numbers=("NCHW", "OIHW", "NCHW"))
    return y + bias.reshape(1, -1, 1, 1)


if __name__ == "__main__":
    key = jax.random.PRNGKey(0)
    kx, kw, kb = jax.random.split(key, 3)

    N, Cin, H, W = 2, 4, 16, 16
    Cout = 8

    x = jax.random.normal(kx, (N, Cin, H, W), dtype=jnp.float32)
    # nn.init.normal_(conv.weight) -> standard normal.  The module initializes bias to
    # zeros; we test with a nonzero bias so the bias-add path is actually verified.
    weight = jax.random.normal(kw, (Cout, Cin, KSIZE, KSIZE), dtype=jnp.float32)
    bias = 0.1 * jax.random.normal(kb, (Cout,), dtype=jnp.float32)

    out = wsconv2d(x, weight, bias, gain=2)
    out = jax.block_until_ready(out)

    ref = jax.block_until_ready(_reference(x, weight, bias, gain=2))
    assert out.shape == (N, Cout, H, W)
    assert jnp.allclose(out, ref, atol=1e-4, rtol=1e-4)

    print("KERNEL_OK")
</pallas_src>

<mosaic_0001>
module attributes {stable_mosaic.version = 11 : i64} {
  func.func @_wsconv_kernel(%arg0: i32, %arg1: memref<1x18x24x4xf32, #tpu.memory_space<vmem>>, %arg2: memref<3x4x24xf32, #tpu.memory_space<vmem>>, %arg3: memref<1x8xf32, #tpu.memory_space<vmem>>, %arg4: memref<1x16x128xf32, #tpu.memory_space<vmem>>) attributes {dimension_semantics = [#tpu.dimension_semantics<parallel>], iteration_bounds = array<i64: 2>, scalar_prefetch = 0 : i64, scratch_operands = 0 : i64, tpu.core_type = #tpu.core_type<tc>, window_params = [{transform_indices = @transform_0, window_bounds = array<i64: 1, 18, 24, 4>}, {pipeline_mode = #tpu.pipeline_mode<synchronous>, transform_indices = @transform_1, window_bounds = array<i64: 3, 4, 24>}, {pipeline_mode = #tpu.pipeline_mode<synchronous>, transform_indices = @transform_2, window_bounds = array<i64: 1, 8>}, {transform_indices = @transform_3, window_bounds = array<i64: 1, 16, 128>}]} {
    %c0 = arith.constant 0 : index
    %c0_0 = arith.constant 0 : index
    %c0_1 = arith.constant 0 : index
    %c0_2 = arith.constant 0 : index
    %0 = vector.load %arg1[%c0, %c0_0, %c0_1, %c0_2] : memref<1x18x24x4xf32, #tpu.memory_space<vmem>>, vector<1x18x24x4xf32>
    %1 = vector.shape_cast %0 : vector<1x18x24x4xf32> to vector<432x4xf32>
    %c0_3 = arith.constant 0 : index
    %c0_4 = arith.constant 0 : index
    %c0_5 = arith.constant 0 : index
    %2 = vector.load %arg2[%c0_3, %c0_4, %c0_5] : memref<3x4x24xf32, #tpu.memory_space<vmem>>, vector<1x4x24xf32>
    %3 = vector.shape_cast %2 : vector<1x4x24xf32> to vector<4x24xf32>
    %cst = arith.constant dense<0.000000e+00> : vector<432x24xf32>
    %4 = tpu.matmul %1, %3, %cst {dimension_numbers = #tpu.dot_dimension_numbers<[1], [0], [0], [1], [0, 0, 1, 1], [], []>} : vector<432x4xf32>, vector<4x24xf32>, vector<432x24xf32> -> vector<432x24xf32>
    %5 = vector.shape_cast %4 : vector<432x24xf32> to vector<1x18x24x24xf32>
    %c1 = arith.constant 1 : index
    %c0_6 = arith.constant 0 : index
    %c0_7 = arith.constant 0 : index
    %6 = vector.load %arg2[%c1, %c0_6, %c0_7] : memref<3x4x24xf32, #tpu.memory_space<vmem>>, vector<1x4x24xf32>
    %7 = vector.shape_cast %6 : vector<1x4x24xf32> to vector<4x24xf32>
    %cst_8 = arith.constant dense<0.000000e+00> : vector<432x24xf32>
    %8 = tpu.matmul %1, %7, %cst_8 {dimension_numbers = #tpu.dot_dimension_numbers<[1], [0], [0], [1], [0, 0, 1, 1], [], []>} : vector<432x4xf32>, vector<4x24xf32>, vector<432x24xf32> -> vector<432x24xf32>
    %9 = vector.shape_cast %8 : vector<432x24xf32> to vector<1x18x24x24xf32>
    %c2 = arith.constant 2 : index
    %c0_9 = arith.constant 0 : index
    %c0_10 = arith.constant 0 : index
    %10 = vector.load %arg2[%c2, %c0_9, %c0_10] : memref<3x4x24xf32, #tpu.memory_space<vmem>>, vector<1x4x24xf32>
    %11 = vector.shape_cast %10 : vector<1x4x24xf32> to vector<4x24xf32>
    %cst_11 = arith.constant dense<0.000000e+00> : vector<432x24xf32>
    %12 = tpu.matmul %1, %11, %cst_11 {dimension_numbers = #tpu.dot_dimension_numbers<[1], [0], [0], [1], [0, 0, 1, 1], [], []>} : vector<432x4xf32>, vector<4x24xf32>, vector<432x24xf32> -> vector<432x24xf32>
    %13 = vector.shape_cast %12 : vector<432x24xf32> to vector<1x18x24x24xf32>
    %14 = vector.extract_strided_slice %5 {offsets = [0, 0, 0, 0], sizes = [1, 16, 24, 24], strides = [1, 1, 1, 1]} : vector<1x18x24x24xf32> to vector<1x16x24x24xf32>
    %15 = vector.extract_strided_slice %9 {offsets = [0, 1, 0, 0], sizes = [1, 16, 24, 24], strides = [1, 1, 1, 1]} : vector<1x18x24x24xf32> to vector<1x16x24x24xf32>
    %16 = arith.addf %14, %15 : vector<1x16x24x24xf32>
    %17 = vector.extract_strided_slice %13 {offsets = [0, 2, 0, 0], sizes = [1, 16, 24, 24], strides = [1, 1, 1, 1]} : vector<1x18x24x24xf32> to vector<1x16x24x24xf32>
    %18 = arith.addf %16, %17 : vector<1x16x24x24xf32>
    %c0_12 = arith.constant 0 : index
    %c0_13 = arith.constant 0 : index
    %19 = vector.load %arg3[%c0_12, %c0_13] : memref<1x8xf32, #tpu.memory_space<vmem>>, vector<1x8xf32>
    %20 = vector.shape_cast %19 : vector<1x8xf32> to vector<1x1x1x8xf32>
    %21 = vector.extract_strided_slice %18 {offsets = [0, 0, 0, 0], sizes = [1, 16, 16, 8], strides = [1, 1, 1, 1]} : vector<1x16x24x24xf32> to vector<1x16x16x8xf32>
    %22 = vector.broadcast %20 : vector<1x1x1x8xf32> to vector<1x16x16x8xf32>
    %23 = arith.addf %22, %21 : vector<1x16x16x8xf32>
    %24 = vector.extract_strided_slice %18 {offsets = [0, 0, 1, 8], sizes = [1, 16, 16, 8], strides = [1, 1, 1, 1]} : vector<1x16x24x24xf32> to vector<1x16x16x8xf32>
    %25 = arith.addf %23, %24 : vector<1x16x16x8xf32>
    %26 = vector.extract_strided_slice %18 {offsets = [0, 0, 2, 16], sizes = [1, 16, 16, 8], strides = [1, 1, 1, 1]} : vector<1x16x24x24xf32> to vector<1x16x16x8xf32>
    %27 = arith.addf %25, %26 : vector<1x16x16x8xf32>
    %28 = vector.shape_cast %27 : vector<1x16x16x8xf32> to vector<1x16x128xf32>
    %c0_14 = arith.constant 0 : index
    %c0_15 = arith.constant 0 : index
    %c0_16 = arith.constant 0 : index
    %29 = vector.load %arg4[%c0_14, %c0_15, %c0_16] : memref<1x16x128xf32, #tpu.memory_space<vmem>>, vector<1x16x128xf32>
    tpu.vector_store %arg4[%c0_14, %c0_15, %c0_16], %28 {strides = array<i32>} : memref<1x16x128xf32, #tpu.memory_space<vmem>>, vector<1x16x128xf32>,
    return
  }
  func.func @transform_0(%arg0: i32) -> (i32, i32, i32, i32) {
    %c0_i32 = arith.constant 0 : i32
    %c0_i32_0 = arith.constant 0 : i32
    %c0_i32_1 = arith.constant 0 : i32
    %c0_i32_2 = arith.constant 0 : i32
    return %arg0, %c0_i32, %c0_i32_0, %c0_i32_1 : i32, i32, i32, i32
  }
  func.func @transform_1(%arg0: i32) -> (i32, i32, i32) {
    %c0_i32 = arith.constant 0 : i32
    %c0_i32_0 = arith.constant 0 : i32
    %c0_i32_1 = arith.constant 0 : i32
    %c0_i32_2 = arith.constant 0 : i32
    return %c0_i32, %c0_i32_0, %c0_i32_1 : i32, i32, i32
  }
  func.func @transform_2(%arg0: i32) -> (i32, i32) {
    %c0_i32 = arith.constant 0 : i32
    %c0_i32_0 = arith.constant 0 : i32
    %c0_i32_1 = arith.constant 0 : i32
    return %c0_i32, %c0_i32_0 : i32, i32
  }
  func.func @transform_3(%arg0: i32) -> (i32, i32, i32) {
    %c0_i32 = arith.constant 0 : i32
    %c0_i32_0 = arith.constant 0 : i32
    %c0_i32_1 = arith.constant 0 : i32
    return %arg0, %c0_i32, %c0_i32_0 : i32, i32, i32
  }
}

</mosaic_0001>

<bundles_post_ra>
// kernel: tpu_custom_call.1
= control target key start
LH: loop header
LB: loop body
LE: loop exit
PB: predicated region body
PF: predicated region fallthrough
CT: control target
= control target key end

     0   :  { %8 = vsyncpa [#allocation3], 0  ;;  %s5048_s0 = inlined_call_operand.vmem [shape: f32[2,18,24,4], index: 0, kind: input, shape index: {}]   ;;  %s5049_s1 = inlined_call_operand.vmem [shape: f32[3,4,24], index: 1, kind: input, shape index: {}]   ;;  %s5050_s2 = inlined_call_operand.vmem [shape: f32[1,8], index: 2, kind: input, shape index: {}]   ;;  %s5051_s3 = inlined_call_operand.hbm [shape: f32[2,16,128], index: 3, kind: output, shape index: {}]  }
   0x1   :  { %10 = vsyncpa [#allocation3 + $0x1], 0  ;;  %s3531_s12 = smov 0   ;;  %s3533_s13 = smov 0  }
   0x2   :  { %s3535_s14 = smov 0   ;;  %s3537_s15 = smov 0  }
   0x3 LB: > { %s3552_s16 = sadd.s32 4294967295, %s3490_s15   ;;  %s2776_s17 = sadd.s32 4294967294, %s3490_s15   ;;  %s3490_s15 = sphi %s3537_s15, %s5090_s15   ;;  %s3486_s14 = sphi %s3535_s14, %s5089_s14   ;;  %s3482_s13 = sphi %s3533_s13, %s5088_s13   ;;  %s3478_s12 = sphi %s3531_s12, %s5087_s12  }
   0x4   : > { %s3556_s18 = sadd.s32 1, %s3490_s15   ;;  %s91_s19 = sadd.s32 1, %s3486_s14 }
   0x5   : > { %s88_s20 = ssub.s32 %s3490_s15, %s3556_s18  ;;  %p101_p0 = scmp.ne.s32.totalorder %s3486_s14, %s3482_s13 }
   0x6   : > { %p89_p1 = scmp.eq.s32.totalorder %s88_s20, 0  ;;  %p102_p2 = scmp.eq.s32.totalorder %s3552_s16, 1 }
   0x7   : > { %p107_p3 = scmp.ne.s32.totalorder %s3482_s13, %s3478_s12  ;;  %p108_p4 = scmp.eq.s32.totalorder %s2776_s17, 1 }
   0x8   : > { %s3567_s21 = scalar_select %p89_p1, %s3486_s14, %s91_s19  }
   0x9   : > { %p3569_p5 = por %p102_p2, %p101_p0  ;;  %p3573_p6 = por %p108_p4, %p107_p3 }
   0xa   : > { %p2779_p7 = scmp.ge.s32.totalorder %s3490_s15, 1  ;;  %p140_p8 = scmp.lt.s32.totalorder %s3490_s15, 3 }
   0xc   : > { %p141_p9 = pnand %p2779_p7, %p140_p8 }
   0xe   : > { %144 = sbr.rel (%p141_p9) target bundleno = 733 (0x2dd), region = 32 }
  0x13   : > { %v223_v0 = vld [vmem:[%s5049_s1] sm:$0xf]  ;;  %vm387_vm0 = vcmask 1043456   ;;  %p164_p10 = scmp.lt.s32.totalorder %s3552_s16, 1  ;;  %v2893_v1 = vld [vmem:[%s5049_s1 + $0x8] sm:$0xf] }
  0x14   : > { %3121 = vmatprep.subr.msk.mxu0 %vm387_vm0, %v223_v0  ;;  %3370 = vmatprep.subr.msk.mxu1 %vm387_vm0, %v223_v0  ;;  %v2837_v2 = vld [vmem:[%s5049_s1 + $0x4] sm:$0xf]  ;;  %vm224_vm1 = vcmask 31744   ;;  %vm1571_vm2 = vcmask 1046528   ;;  %vm1780_vm3 = vcmask 1045504   ;;  %s3492_s8 = smov 120  }
  0x15   : > { %3122 = vmatpush3.msk.msra.mxu0 %vm387_vm0, %v223_v0  ;;  %3371 = vmatpush3.msk.msra.mxu1 %vm387_vm0, %v223_v0  ;;  %s165_s30 = scalar_select %p164_p10, %s3552_s16, 1  ;;  %vm2653_vm4 = vcmask 64512   ;;  %vm2656_vm5 = vcmask 130048   ;;  %vm2659_vm6 = vcmask 195584   ;;  %vm2662_vm7 = vcmask 261120  }
  0x16   : > { %3287 = vmatprep.subr.msk.mxu0 %vm387_vm0, %v2893_v1  ;;  %3204 = vmatprep.subr.msk.mxu1 %vm387_vm0, %v2837_v2  ;;  %s3493_s9 = smov 112   ;;  %s3496_s17 = smov 8   ;;  %vm2665_vm8 = vcmask 326656   ;;  %vm2668_vm9 = vcmask 392192   ;;  %vm2671_vm10 = vcmask 457728   ;;  %vm2674_vm11 = vcmask 523264  }
  0x17   : > { %s3372_s4 = smul.u32 432, %s165_s30  ;;  %s3497_s19 = smov 16   ;;  %vm2677_vm12 = vcmask 588800   ;;  %vm2680_vm13 = vcmask 654336   ;;  %vm2683_vm14 = vcmask 719872   ;;  %vm2686_vm15 = vcmask 785408  }
  0x18   : > { %s3498_s20 = smov 24   ;;  %s3499_s24 = smov 32  }
  0x19   : > { %s3599_s7 = scalar_lea.vmem %s5048_s0, %s3372_s4  ;;  %s3500_s25 = smov 40  }
  0x1a   : > { %v3602_v3 = vld [vmem:[%s3599_s7] sm:$0xff]  ;;  %v3608_v5 = vld [vmem:[%s3599_s7 + $0x8] sm:$0xff]  ;;  %v3618_v7 = vld [vmem:[%s3599_s7 + $0x10] sm:$0xff]  ;;  %s3501_s26 = smov 48   ;;  %s3502_s27 = smov 56  }
  0x1b   : > { %v3605_v4 = vld [vmem:[%s3599_s7 + $0xe0] sm:$0xff]  ;;  %3123 = vmatprep.mubr.msk.f32.mxu0 %vm224_vm1, %v3602_v3  ;;  %v3615_v6 = vld [vmem:[%s3599_s7 + $0xe8] sm:$0xff]  ;;  %v3621_v8 = vld [vmem:[%s3599_s7 + $0xf0] sm:$0xff]  ;;  %s3503_s28 = smov 64   ;;  %s3504_s29 = smov 72  }
  0x1c   : > { %3165 = vmatprep.mubr.msk.f32.mxu1 %vm224_vm1, %v3605_v4  ;;  %3124 = vmatmul.mubr.msk.f32.vlgmr.msra.gmra.mxu0 %vm224_vm1, %v3608_v5  ;;  %v3631_v9 = vld [vmem:[%s3599_s7 + $0x18] sm:$0xff]  ;;  %v3639_v11 = vld [vmem:[%s3599_s7 + $0x20] sm:$0xff]  ;;  %v3654_v13 = vld [vmem:[%s3599_s7 + $0x28] sm:$0xff]  ;;  %s3505_s30 = smov 80   ;;  %s3506_s4 = smov 88  }
  0x1d   : > { %3166 = vmatmul.mubr.msk.f32.vlgmr.msra.gmra.mxu1 %vm224_vm1, %v3615_v6  ;;  %3288 = vmatpush3.msk.msra.mxu0 %vm387_vm0, %v2893_v1  ;;  %v3634_v10 = vld [vmem:[%s3599_s7 + $0xf8] sm:$0xff]  ;;  %v3642_v12 = vld [vmem:[%s3599_s7 + $0x100] sm:$0xff]  ;;  %v3657_v14 = vld [vmem:[%s3599_s7 + $0x108] sm:$0xff]  ;;  %s3507_s5 = smov 96   ;;  %s3508_s6 = smov 104  }
  0x1e   : > { %3126 = vmatprep.mubr.msk.f32.mxu0 %vm224_vm1, %v3618_v7  ;;  %3168 = vmatprep.mubr.msk.f32.mxu1 %vm224_vm1, %v3621_v8  ;;  %v3660_v15 = vld [vmem:[%s3599_s7 + $0x30] sm:$0xff]  ;;  %v3674_v17 = vld [vmem:[%s3599_s7 + $0x38] sm:$0xff]  ;;  %v3680_v19 = vld [vmem:[%s3599_s7 + $0x40] sm:$0xff]  ;;  %s2955_s11 = sshll.u32 %s3552_s16, 8 }
  0x1f   : > { %3205 = vmatpush3.msk.msra.mxu1 %vm387_vm0, %v2837_v2  ;;  %v3663_v16 = vld [vmem:[%s3599_s7 + $0x110] sm:$0xff]  ;;  %v3677_v18 = vld [vmem:[%s3599_s7 + $0x118] sm:$0xff]  ;;  %v3683_v20 = vld [vmem:[%s3599_s7 + $0x120] sm:$0xff]  ;;  %vm2689_vm0 = vcmask 850944  }
  0x20   : > { %3127 = vmatmul.mubr.msk.f32.gmra.mxu0 %vm224_vm1, %v3631_v9  ;;  %v3694_v21 = vld [vmem:[%s3599_s7 + $0x48] sm:$0xff]  ;;  %v3700_v23 = vld [vmem:[%s3599_s7 + $0x50] sm:$0xff]  ;;  %v3714_v25 = vld [vmem:[%s3599_s7 + $0x58] sm:$0xff] }
  0x21   : > { %3169 = vmatmul.mubr.msk.f32.gmra.mxu1 %vm224_vm1, %v3634_v10  ;;  %3129 = vmatprep.mubr.msk.f32.mxu0 %vm224_vm1, %v3639_v11  ;;  %v3697_v22 = vld [vmem:[%s3599_s7 + $0x128] sm:$0xff]  ;;  %v3703_v24 = vld [vmem:[%s3599_s7 + $0x130] sm:$0xff]  ;;  %v3717_v26 = vld [vmem:[%s3599_s7 + $0x138] sm:$0xff] }
  0x22   : > { %3171 = vmatprep.mubr.msk.f32.mxu1 %vm224_vm1, %v3642_v12  ;;  %v3720_v27 = vld [vmem:[%s3599_s7 + $0x60] sm:$0xff]  ;;  %v3734_v29 = vld [vmem:[%s3599_s7 + $0x68] sm:$0xff]  ;;  %v3740_v31 = vld [vmem:[%s3599_s7 + $0x70] sm:$0xff] }
  0x23   : > { %v3723_v28 = vld [vmem:[%s3599_s7 + $0x140] sm:$0xff]  ;;  %v3737_v30 = vld [vmem:[%s3599_s7 + $0x148] sm:$0xff]  ;;  %v3743_v32 = vld [vmem:[%s3599_s7 + $0x150] sm:$0xff] }
  0x24   : > { %3130 = vmatmul.mubr.msk.f32.gmra.mxu0 %vm224_vm1, %v3654_v13  ;;  %v3754_v33 = vld [vmem:[%s3599_s7 + $0x78] sm:$0xff]  ;;  %v3760_v35 = vld [vmem:[%s3599_s7 + $0x80] sm:$0xff]  ;;  %v3774_v37 = vld [vmem:[%s3599_s7 + $0x88] sm:$0xff] }
  0x25   : > { %3172 = vmatmul.mubr.msk.f32.gmra.mxu1 %vm224_vm1, %v3657_v14  ;;  %3132 = vmatprep.mubr.msk.f32.mxu0 %vm224_vm1, %v3660_v15  ;;  %v3757_v34 = vld [vmem:[%s3599_s7 + $0x158] sm:$0xff]  ;;  %v3763_v36 = vld [vmem:[%s3599_s7 + $0x160] sm:$0xff]  ;;  %v3777_v38 = vld [vmem:[%s3599_s7 + $0x168] sm:$0xff] }
  0x26   : > { %3174 = vmatprep.mubr.msk.f32.mxu1 %vm224_vm1, %v3663_v16  ;;  %v3780_v39 = vld [vmem:[%s3599_s7 + $0x90] sm:$0xff]  ;;  %v3794_v41 = vld [vmem:[%s3599_s7 + $0x98] sm:$0xff]  ;;  %v3800_v43 = vld [vmem:[%s3599_s7 + $0xa0] sm:$0xff] }
  0x27   : > { %v3783_v40 = vld [vmem:[%s3599_s7 + $0x170] sm:$0xff]  ;;  %v3797_v42 = vld [vmem:[%s3599_s7 + $0x178] sm:$0xff]  ;;  %v3803_v44 = vld [vmem:[%s3599_s7 + $0x180] sm:$0xff] }
  0x28   : > { %3133 = vmatmul.mubr.msk.f32.gmra.mxu0 %vm224_vm1, %v3674_v17  ;;  %v3814_v45 = vld [vmem:[%s3599_s7 + $0xa8] sm:$0xff]  ;;  %v3820_v47 = vld [vmem:[%s3599_s7 + $0xb0] sm:$0xff]  ;;  %v3834_v49 = vld [vmem:[%s3599_s7 + $0xb8] sm:$0xff] }
  0x29   : > { %3175 = vmatmul.mubr.msk.f32.gmra.mxu1 %vm224_vm1, %v3677_v18  ;;  %3135 = vmatprep.mubr.msk.f32.mxu0 %vm224_vm1, %v3680_v19  ;;  %v3817_v46 = vld [vmem:[%s3599_s7 + $0x188] sm:$0xff]  ;;  %v3823_v48 = vld [vmem:[%s3599_s7 + $0x190] sm:$0xff]  ;;  %v3837_v50 = vld [vmem:[%s3599_s7 + $0x198] sm:$0xff] }
  0x2a   : > { %3177 = vmatprep.mubr.msk.f32.mxu1 %vm224_vm1, %v3683_v20  ;;  %v3840_v51 = vld [vmem:[%s3599_s7 + $0xc0] sm:$0xff]  ;;  %v194_v53 = vld [vmem:[%s3599_s7 + $0xc8] sm:$0xff]  ;;  %v195_v55 = vld [vmem:[%s3599_s7 + $0xd0] sm:$0xff] }
  0x2b   : > { %v3843_v52 = vld [vmem:[%s3599_s7 + $0x1a0] sm:$0xff]  ;;  %v3855_v54 = vld [vmem:[%s3599_s7 + $0x1a8] sm:$0xff]  ;;  %v196_v56 = vld [vmem:[%s3599_s7 + $0xd8] sm:$0xff]  ;;  %s161_s7 = sand.u32 1, %s3482_s13  }
  0x2c   : > { %3136 = vmatmul.mubr.msk.f32.gmra.mxu0 %vm224_vm1, %v3694_v21  ;;  %s5007_s16 = scalar_lea.sflag [#allocation3], %s161_s7 }
  0x2d   : > { %3178 = vmatmul.mubr.msk.f32.gmra.mxu1 %vm224_vm1, %v3697_v22  ;;  %3138 = vmatprep.mubr.msk.f32.mxu0 %vm224_vm1, %v3700_v23 }
  0x2e   : > { %3180 = vmatprep.mubr.msk.f32.mxu1 %vm224_vm1, %v3703_v24 }
  0x30   : > { %3139 = vmatmul.mubr.msk.f32.gmra.mxu0 %vm224_vm1, %v3714_v25 }
  0x31   : > { %3181 = vmatmul.mubr.msk.f32.gmra.mxu1 %vm224_vm1, %v3717_v26  ;;  %3141 = vmatprep.mubr.msk.f32.mxu0 %vm224_vm1, %v3720_v27 }
  0x32   : > { %3183 = vmatprep.mubr.msk.f32.mxu1 %vm224_vm1, %v3723_v28 }
  0x34   : > { %3142 = vmatmul.mubr.msk.f32.gmra.mxu0 %vm224_vm1, %v3734_v29 }
  0x35   : > { %3184 = vmatmul.mubr.msk.f32.gmra.mxu1 %vm224_vm1, %v3737_v30  ;;  %3144 = vmatprep.mubr.msk.f32.mxu0 %vm224_vm1, %v3740_v31 }
  0x36   : > { %3186 = vmatprep.mubr.msk.f32.mxu1 %vm224_vm1, %v3743_v32 }
  0x38   : > { %3145 = vmatmul.mubr.msk.f32.gmra.mxu0 %vm224_vm1, %v3754_v33 }
  0x39   : > { %3187 = vmatmul.mubr.msk.f32.gmra.mxu1 %vm224_vm1, %v3757_v34  ;;  %3147 = vmatprep.mubr.msk.f32.mxu0 %vm224_vm1, %v3760_v35 }
  0x3a   : > { %3189 = vmatprep.mubr.msk.f32.mxu1 %vm224_vm1, %v3763_v36 }
  0x3c   : > { %3148 = vmatmul.mubr.msk.f32.gmra.mxu0 %vm224_vm1, %v3774_v37 }
  0x3d   : > { %3190 = vmatmul.mubr.msk.f32.gmra.mxu1 %vm224_vm1, %v3777_v38  ;;  %3150 = vmatprep.mubr.msk.f32.mxu0 %vm224_vm1, %v3780_v39 }
  0x3e   : > { %3192 = vmatprep.mubr.msk.f32.mxu1 %vm224_vm1, %v3783_v40 }
  0x40   : > { %3151 = vmatmul.mubr.msk.f32.gmra.mxu0 %vm224_vm1, %v3794_v41 }
  0x41   : > { %3193 = vmatmul.mubr.msk.f32.gmra.mxu1 %vm224_vm1, %v3797_v42  ;;  %3153 = vmatprep.mubr.msk.f32.mxu0 %vm224_vm1, %v3800_v43 }
  0x42   : > { %3195 = vmatprep.mubr.msk.f32.mxu1 %vm224_vm1, %v3803_v44 }
  0x44   : > { %3154 = vmatmul.mubr.msk.f32.gmra.mxu0 %vm224_vm1, %v3814_v45 }
  0x45   : > { %3196 = vmatmul.mubr.msk.f32.gmra.mxu1 %vm224_vm1, %v3817_v46  ;;  %3156 = vmatprep.mubr.msk.f32.mxu0 %vm224_vm1, %v3820_v47 }
  0x46   : > { %3198 = vmatprep.mubr.msk.f32.mxu1 %vm224_vm1, %v3823_v48 }
  0x48   : > { %3157 = vmatmul.mubr.msk.f32.gmra.mxu0 %vm224_vm1, %v3834_v49 }
  0x49   : > { %3199 = vmatmul.mubr.msk.f32.gmra.mxu1 %vm224_vm1, %v3837_v50  ;;  %3159 = vmatprep.mubr.msk.f32.mxu0 %vm224_vm1, %v3840_v51 }
  0x4a   : > { %3201 = vmatprep.mubr.msk.f32.mxu1 %vm224_vm1, %v3843_v52 }
  0x4c   : > { %3160 = vmatmul.mubr.msk.f32.gmra.mxu0 %vm224_vm1, %v194_v53 }
  0x4d   : > { %3202 = vmatmul.mubr.msk.f32.gmra.mxu1 %vm224_vm1, %v3855_v54  ;;  %3162 = vmatprep.mubr.msk.f32.mxu0 %vm224_vm1, %v195_v55 }
  0x4e   : > { %3206 = vmatprep.mubr.msk.f32.mxu1 %vm224_vm1, %v3602_v3 }
  0x50   : > { %3163 = vmatmul.mubr.msk.f32.gmra.mxu0 %vm224_vm1, %v196_v56 }
  0x51   : > { %3207 = vmatmul.mubr.msk.f32.vlgmr.msra.gmra.mxu1 %vm224_vm1, %v3608_v5  ;;  %3289 = vmatprep.mubr.msk.f32.mxu0 %vm224_vm1, %v3602_v3 }
  0x52   : > { %3209 = vmatprep.mubr.msk.f32.mxu1 %vm224_vm1, %v3618_v7 }
  0x54   : > { %3290 = vmatmul.mubr.msk.f32.vlgmr.msra.gmra.mxu0 %vm224_vm1, %v3608_v5 }
  0x55   : > { %3210 = vmatmul.mubr.msk.f32.gmra.mxu1 %vm224_vm1, %v3631_v9  ;;  %3292 = vmatprep.mubr.msk.f32.mxu0 %vm224_vm1, %v3618_v7 }
  0x56   : > { %3212 = vmatprep.mubr.msk.f32.mxu1 %vm224_vm1, %v3639_v11 }
  0x58   : > { %3293 = vmatmul.mubr.msk.f32.gmra.mxu0 %vm224_vm1, %v3631_v9 }
  0x59   : > { %3213 = vmatmul.mubr.msk.f32.gmra.mxu1 %vm224_vm1, %v3654_v13  ;;  %3295 = vmatprep.mubr.msk.f32.mxu0 %vm224_vm1, %v3639_v11 }
  0x5a   : > { %3215 = vmatprep.mubr.msk.f32.mxu1 %vm224_vm1, %v3660_v15 }
  0x5c   : > { %3296 = vmatmul.mubr.msk.f32.gmra.mxu0 %vm224_vm1, %v3654_v13 }
  0x5d   : > { %3216 = vmatmul.mubr.msk.f32.gmra.mxu1 %vm224_vm1, %v3674_v17  ;;  %3298 = vmatprep.mubr.msk.f32.mxu0 %vm224_vm1, %v3660_v15 }
  0x5e   : > { %3218 = vmatprep.mubr.msk.f32.mxu1 %vm224_vm1, %v3680_v19 }
  0x60   : > { %3299 = vmatmul.mubr.msk.f32.gmra.mxu0 %vm224_vm1, %v3674_v17 }
  0x61   : > { %3219 = vmatmul.mubr.msk.f32.gmra.mxu1 %vm224_vm1, %v3694_v21  ;;  %3301 = vmatprep.mubr.msk.f32.mxu0 %vm224_vm1, %v3680_v19 }
  0x62   : > { %3221 = vmatprep.mubr.msk.f32.mxu1 %vm224_vm1, %v3700_v23 }
  0x64   : > { %3302 = vmatmul.mubr.msk.f32.gmra.mxu0 %vm224_vm1, %v3694_v21 }
  0x65   : > { %3222 = vmatmul.mubr.msk.f32.gmra.mxu1 %vm224_vm1, %v3714_v25  ;;  %3304 = vmatprep.mubr.msk.f32.mxu0 %vm224_vm1, %v3700_v23 }
  0x66   : > { %3224 = vmatprep.mubr.msk.f32.mxu1 %vm224_vm1, %v3720_v27 }
  0x68   : > { %3305 = vmatmul.mubr.msk.f32.gmra.mxu0 %vm224_vm1, %v3714_v25 }
  0x69   : > { %3225 = vmatmul.mubr.msk.f32.gmra.mxu1 %vm224_vm1, %v3734_v29  ;;  %3307 = vmatprep.mubr.msk.f32.mxu0 %vm224_vm1, %v3720_v27 }
  0x6a   : > { %3227 = vmatprep.mubr.msk.f32.mxu1 %vm224_vm1, %v3740_v31 }
  0x6c   : > { %3308 = vmatmul.mubr.msk.f32.gmra.mxu0 %vm224_vm1, %v3734_v29 }
  0x6d   : > { %3228 = vmatmul.mubr.msk.f32.gmra.mxu1 %vm224_vm1, %v3754_v33  ;;  %3310 = vmatprep.mubr.msk.f32.mxu0 %vm224_vm1, %v3740_v31 }
  0x6e   : > { %3230 = vmatprep.mubr.msk.f32.mxu1 %vm224_vm1, %v3760_v35 }
  0x70   : > { %3311 = vmatmul.mubr.msk.f32.gmra.mxu0 %vm224_vm1, %v3754_v33 }
  0x71   : > { %3231 = vmatmul.mubr.msk.f32.gmra.mxu1 %vm224_vm1, %v3774_v37  ;;  %3313 = vmatprep.mubr.msk.f32.mxu0 %vm224_vm1, %v3760_v35 }
  0x72   : > { %3233 = vmatprep.mubr.msk.f32.mxu1 %vm224_vm1, %v3780_v39 }
  0x74   : > { %3314 = vmatmul.mubr.msk.f32.gmra.mxu0 %vm224_vm1, %v3774_v37 }
  0x75   : > { %3234 = vmatmul.mubr.msk.f32.gmra.mxu1 %vm224_vm1, %v3794_v41  ;;  %3316 = vmatprep.mubr.msk.f32.mxu0 %vm224_vm1, %v3780_v39 }
  0x76   : > { %3236 = vmatprep.mubr.msk.f32.mxu1 %vm224_vm1, %v3800_v43 }
  0x78   : > { %3317 = vmatmul.mubr.msk.f32.gmra.mxu0 %vm224_vm1, %v3794_v41 }
  0x79   : > { %3237 = vmatmul.mubr.msk.f32.gmra.mxu1 %vm224_vm1, %v3814_v45  ;;  %3319 = vmatprep.mubr.msk.f32.mxu0 %vm224_vm1, %v3800_v43 }
  0x7a   : > { %3239 = vmatprep.mubr.msk.f32.mxu1 %vm224_vm1, %v3820_v47 }
  0x7c   : > { %3320 = vmatmul.mubr.msk.f32.gmra.mxu0 %vm224_vm1, %v3814_v45 }
  0x7d   : > { %3240 = vmatmul.mubr.msk.f32.gmra.mxu1 %vm224_vm1, %v3834_v49  ;;  %3322 = vmatprep.mubr.msk.f32.mxu0 %vm224_vm1, %v3820_v47 }
  0x7e   : > { %3242 = vmatprep.mubr.msk.f32.mxu1 %vm224_vm1, %v3840_v51 }
  0x80   : > { %3323 = vmatmul.mubr.msk.f32.gmra.mxu0 %vm224_vm1, %v3834_v49 }
  0x81   : > { %3243 = vmatmul.mubr.msk.f32.gmra.mxu1 %vm224_vm1, %v194_v53  ;;  %3325 = vmatprep.mubr.msk.f32.mxu0 %vm224_vm1, %v3840_v51 }
  0x82   : > { %3245 = vmatprep.mubr.msk.f32.mxu1 %vm224_vm1, %v195_v55 }
  0x84   : > { %3326 = vmatmul.mubr.msk.f32.gmra.mxu0 %vm224_vm1, %v194_v53 }
  0x85   : > { %3246 = vmatmul.mubr.msk.f32.gmra.mxu1 %vm224_vm1, %v196_v56  ;;  %3328 = vmatprep.mubr.msk.f32.mxu0 %vm224_vm1, %v195_v55 }
  0x86   : > { %3248 = vmatprep.mubr.msk.f32.mxu1 %vm224_vm1, %v3605_v4 }
  0x88   : > { %3329 = vmatmul.mubr.msk.f32.gmra.mxu0 %vm224_vm1, %v196_v56 }
  0x89   : > { %3249 = vmatmul.mubr.msk.f32.gmra.mxu1 %vm224_vm1, %v3615_v6  ;;  %3331 = vmatprep.mubr.msk.f32.mxu0 %vm224_vm1, %v3605_v4 }
  0x8a   : > { %3251 = vmatprep.mubr.msk.f32.mxu1 %vm224_vm1, %v3621_v8 }
  0x8c   : > { %3332 = vmatmul.mubr.msk.f32.gmra.mxu0 %vm224_vm1, %v3615_v6 }
  0x8d   : > { %3252 = vmatmul.mubr.msk.f32.gmra.mxu1 %vm224_vm1, %v3634_v10  ;;  %3334 = vmatprep.mubr.msk.f32.mxu0 %vm224_vm1, %v3621_v8 }
  0x8e   : > { %3254 = vmatprep.mubr.msk.f32.mxu1 %vm224_vm1, %v3642_v12 }
  0x90   : > { %3335 = vmatmul.mubr.msk.f32.gmra.mxu0 %vm224_vm1, %v3634_v10 }
  0x91   : > { %3255 = vmatmul.mubr.msk.f32.gmra.mxu1 %vm224_vm1, %v3657_v14  ;;  %3337 = vmatprep.mubr.msk.f32.mxu0 %vm224_vm1, %v3642_v12 }
  0x92   : > { %3257 = vmatprep.mubr.msk.f32.mxu1 %vm224_vm1, %v3663_v16 }
  0x94   : > { %3338 = vmatmul.mubr.msk.f32.gmra.mxu0 %vm224_vm1, %v3657_v14 }
  0x95   : > { %3258 = vmatmul.mubr.msk.f32.gmra.mxu1 %vm224_vm1, %v3677_v18  ;;  %3340 = vmatprep.mubr.msk.f32.mxu0 %vm224_vm1, %v3663_v16 }
  0x96   : > { %3260 = vmatprep.mubr.msk.f32.mxu1 %vm224_vm1, %v3683_v20 }
  0x98   : > { %3341 = vmatmul.mubr.msk.f32.gmra.mxu0 %vm224_vm1, %v3677_v18 }
  0x99   : > { %3261 = vmatmul.mubr.msk.f32.gmra.mxu1 %vm224_vm1, %v3697_v22  ;;  %3343 = vmatprep.mubr.msk.f32.mxu0 %vm224_vm1, %v3683_v20 }
  0x9a   : > { %3263 = vmatprep.mubr.msk.f32.mxu1 %vm224_vm1, %v3703_v24 }
  0x9c   : > { %3344 = vmatmul.mubr.msk.f32.gmra.mxu0 %vm224_vm1, %v3697_v22 }
  0x9d   : > { %3264 = vmatmul.mubr.msk.f32.gmra.mxu1 %vm224_vm1, %v3717_v26  ;;  %3346 = vmatprep.mubr.msk.f32.mxu0 %vm224_vm1, %v3703_v24 }
  0x9e   : > { %3266 = vmatprep.mubr.msk.f32.mxu1 %vm224_vm1, %v3723_v28 }
  0xa0   : > { %3347 = vmatmul.mubr.msk.f32.gmra.mxu0 %vm224_vm1, %v3717_v26 }
  0xa1   : > { %3267 = vmatmul.mubr.msk.f32.gmra.mxu1 %vm224_vm1, %v3737_v30  ;;  %3349 = vmatprep.mubr.msk.f32.mxu0 %vm224_vm1, %v3723_v28 }
  0xa2   : > { %3269 = vmatprep.mubr.msk.f32.mxu1 %vm224_vm1, %v3743_v32 }
  0xa4   : > { %3350 = vmatmul.mubr.msk.f32.gmra.mxu0 %vm224_vm1, %v3737_v30 }
  0xa5   : > { %3270 = vmatmul.mubr.msk.f32.gmra.mxu1 %vm224_vm1, %v3757_v34  ;;  %3352 = vmatprep.mubr.msk.f32.mxu0 %vm224_vm1, %v3743_v32 }
  0xa6   : > { %3272 = vmatprep.mubr.msk.f32.mxu1 %vm224_vm1, %v3763_v36 }
  0xa8   : > { %3353 = vmatmul.mubr.msk.f32.gmra.mxu0 %vm224_vm1, %v3757_v34 }
  0xa9   : > { %3273 = vmatmul.mubr.msk.f32.gmra.mxu1 %vm224_vm1, %v3777_v38  ;;  %3355 = vmatprep.mubr.msk.f32.mxu0 %vm224_vm1, %v3763_v36 }
  0xaa   : > { %3275 = vmatprep.mubr.msk.f32.mxu1 %vm224_vm1, %v3783_v40 }
  0xac   : > { %3356 = vmatmul.mubr.msk.f32.gmra.mxu0 %vm224_vm1, %v3777_v38 }
  0xad   : > { %3276 = vmatmul.mubr.msk.f32.gmra.mxu1 %vm224_vm1, %v3797_v42  ;;  %3358 = vmatprep.mubr.msk.f32.mxu0 %vm224_vm1, %v3783_v40 }
  0xae   : > { %3278 = vmatprep.mubr.msk.f32.mxu1 %vm224_vm1, %v3803_v44 }
  0xb0   : > { %3359 = vmatmul.mubr.msk.f32.gmra.mxu0 %vm224_vm1, %v3797_v42 }
  0xb1   : > { %3279 = vmatmul.mubr.msk.f32.gmra.mxu1 %vm224_vm1, %v3817_v46  ;;  %3361 = vmatprep.mubr.msk.f32.mxu0 %vm224_vm1, %v3803_v44 }
  0xb2   : > { %3281 = vmatprep.mubr.msk.f32.mxu1 %vm224_vm1, %v3823_v48 }
  0xb4   : > { %3362 = vmatmul.mubr.msk.f32.gmra.mxu0 %vm224_vm1, %v3817_v46 }
  0xb5   : > { %3282 = vmatmul.mubr.msk.f32.gmra.mxu1 %vm224_vm1, %v3837_v50  ;;  %3364 = vmatprep.mubr.msk.f32.mxu0 %vm224_vm1, %v3823_v48 }
  0xb6   : > { %3284 = vmatprep.mubr.msk.f32.mxu1 %vm224_vm1, %v3843_v52 }
  0xb8   : > { %3365 = vmatmul.mubr.msk.f32.gmra.mxu0 %vm224_vm1, %v3837_v50 }
  0xb9   : > { %3285 = vmatmul.mubr.msk.f32.gmra.mxu1 %vm224_vm1, %v3855_v54  ;;  %3367 = vmatprep.mubr.msk.f32.mxu0 %vm224_vm1, %v3843_v52 }
  0xbc   : > { %3368 = vmatmul.mubr.msk.f32.gmra.mxu0 %vm224_vm1, %v3855_v54  ;;  %vm2692_vm1 = vcmask 916480  }
  0xdc   : > { %v4074_v57 = vpop.f32.mrf.mxu0 }
  0xdd   : > { %v4076_v58 = vpop.f32.mrf.mxu1 }
  0xde   : > { %v4078_v59 = vpop.f32.mrf.mxu0 }
  0xdf   : > { %v4080_v60 = vpop.f32.mrf.mxu1 }
  0xe0   : > { %v4082_v61 = vpop.f32.mrf.mxu0 }
  0xe1   : > { %v4084_v62 = vpop.f32.mrf.mxu1 }
  0xe2   : > { %v4086_v63 = vpop.f32.mrf.mxu0 }
  0xe3   : > { %v4088_v0 = vpop.f32.mrf.mxu1 }
  0xe4   : > { %v4090_v1 = vpop.f32.mrf.mxu0 }
  0xe5   : > { %v4092_v2 = vpop.f32.mrf.mxu1 }
  0xe6   : > { %v4094_v3 = vpop.f32.mrf.mxu0 }
  0xe7   : > { %v4096_v4 = vpop.f32.mrf.mxu1 }
  0xe8   : > { %v4098_v5 = vpop.f32.mrf.mxu0 }
  0xe9   : > { %v4100_v6 = vpop.f32.mrf.mxu1 }
  0xea   : > { %v4102_v7 = vpop.f32.mrf.mxu0 }
  0xeb   : > { %v4104_v8 = vpop.f32.mrf.mxu1 }
  0xec   : > { %v4106_v9 = vpop.f32.mrf.mxu0 }
  0xed   : > { %v4108_v10 = vpop.f32.mrf.mxu1 }
  0xee   : > { %v4110_v11 = vpop.f32.mrf.mxu0 }
  0xef   : > { %v4112_v12 = vpop.f32.mrf.mxu1 }
  0xf0   : > { %v4114_v13 = vpop.f32.mrf.mxu0 }
  0xf1   : > { %v4116_v14 = vpop.f32.mrf.mxu1 }
  0xf2   : > { %v4118_v15 = vpop.f32.mrf.mxu0 }
  0xf3   : > { %v4120_v16 = vpop.f32.mrf.mxu1 }
  0xf4   : > { %v4122_v17 = vpop.f32.mrf.mxu0 }
  0xf5   : > { %v4124_v18 = vpop.f32.mrf.mxu1 }
  0xf6   : > { %5061 = vst [vmem:[#allocation5_spill] sm:$0xff] %v4124_v18  ;;  %v4126_v19 = vpop.f32.mrf.mxu0 }
  0xf7   : > { %v4128_v20 = vpop.f32.mrf.mxu1 }
  0xf8   : > { %v4130_v21 = vpop.f32.mrf.mxu0 }
  0xf9   : > { %v4132_v22 = vpop.f32.mrf.mxu1 }
  0xfa   : > { %5062 = vst [vmem:[#allocation6_spill] sm:$0xff] %v4132_v22  ;;  %v4134_v23 = vpop.f32.mrf.mxu0 }
  0xfb   : > { %v4136_v24 = vpop.f32.mrf.mxu1 }
  0xfc   : > { %v4138_v25 = vpop.f32.mrf.mxu0 }
  0xfd   : > { %v4140_v26 = vpop.f32.mrf.mxu1 }
  0xfe   : > { %5063 = vst [vmem:[#allocation7_spill] sm:$0xff] %v4140_v26  ;;  %v4142_v27 = vpop.f32.mrf.mxu0 }
  0xff   : > { %v4144_v28 = vpop.f32.mrf.mxu1 }
 0x100   : > { %5064 = vst [vmem:[#allocation8_spill] sm:$0xff] %v4144_v28  ;;  %v4146_v29 = vpop.f32.mrf.mxu0 }
 0x101   : > { %v4148_v30 = vpop.f32.mrf.mxu1 }
 0x102   : > { %5065 = vst [vmem:[#allocation9_spill] sm:$0xff] %v4148_v30  ;;  %v4150_v31 = vpop.f32.mrf.mxu0 }
 0x103   : > { %v4152_v32 = vpop.f32.mrf.mxu1 }
 0x104   : > { %5066 = vst [vmem:[#allocation10_spill] sm:$0xff] %v4152_v32  ;;  %v4154_v33 = vpop.f32.mrf.mxu0 }
 0x105   : > { %v3197_v34 = vpop.f32.mrf.mxu1 }
 0x106   : > { %v4156_v35 = vpop.f32.mrf.mxu0 }
 0x107   : > { %v697_v36 = vpop.f32.mrf.mxu1 }
 0x108   : > { %v4158_v37 = vpop.f32.mrf.mxu0 }
 0x109   : > { %v3200_v38 = vpop.f32.mrf.mxu1 }
 0x10a   : > { %v4160_v39 = vpop.f32.mrf.mxu0 }
 0x10b   : > { %v705_v40 = vpop.f32.mrf.mxu1 }
 0x10c   : > { %v4162_v41 = vpop.f32.mrf.mxu0 }
 0x10d   : > { %v3203_v42 = vpop.f32.mrf.mxu1 }
 0x10e   : > { %v4164_v43 = vpop.f32.mrf.mxu0 }
 0x10f   : > { %v713_v44 = vpop.f32.mrf.mxu1 }
 0x110   : > { %v4166_v45 = vpop.f32.mrf.mxu0 }
 0x111   : > { %v3208_v46 = vpop.f32.mrf.mxu1 }
 0x112   : > { %v4168_v47 = vpop.f32.mrf.mxu0 }
 0x113   : > { %v791_v48 = vpop.f32.mrf.mxu1 }
 0x114   : > { %v3291_v50 = vpop.f32.mrf.mxu0 }
 0x115   : > { %v3211_v49 = vpop.f32.mrf.mxu1 }
 0x116   : > { %v1125_v52 = vpop.f32.mrf.mxu0  ;;  %v1388_v46 = vadd.f32 %v3211_v49, %v4078_v59 }
 0x117   : > { %v799_v51 = vpop.f32.mrf.mxu1 }
 0x118   : > { %v3294_v54 = vpop.f32.mrf.mxu0 }
 0x119   : > { %v3214_v53 = vpop.f32.mrf.mxu1 }
 0x11a   : > { %v1133_v56 = vpop.f32.mrf.mxu0 }
 0x11b   : > { %v808_v55 = vpop.f32.mrf.mxu1  ;;  %v1390_v56 = vadd.f32 %v3214_v53, %v4086_v63 }
 0x11c   : > { %v3297_v36 = vpop.f32.mrf.mxu0  ;;  %v1389_v42 = vadd.f32 %v4074_v57, %v808_v55 }
 0x11d   : > { %v3217_v34 = vpop.f32.mrf.mxu1 }
 0x11e   : > { %v1141_v40 = vpop.f32.mrf.mxu0 }
 0x11f   : > { %v818_v38 = vpop.f32.mrf.mxu1 }
 0x120   : > { %v3300_v30 = vpop.f32.mrf.mxu0  ;;  %v1391_v40 = vadd.f32 %v4082_v61, %v818_v38 }
 0x121   : > { %v3220_v44 = vpop.f32.mrf.mxu1  ;;  %v4172_v26 = vadd.f32 %v3300_v30, %v1389_v42 }
 0x122   : > { %v1149_v50 = vpop.f32.mrf.mxu0 }
 0x123   : > { %5067 = vst [vmem:[#allocation11_spill] sm:$0xff] %v4172_v26  ;;  %v828_v48 = vpop.f32.mrf.mxu1  ;;  %v4174_v51 = vadd.f32 %v1388_v46, %v1149_v50  ;;  %v1573_v55 = vrot.slane %v4172_v26, 1  ;;  %v1782_v59 = vrot.slane %v4172_v26, 2 }
 0x124   : > { %v3303_v54 = vpop.f32.mrf.mxu0  ;;  %v1393_v50 = vadd.f32 %v4090_v1, %v828_v48 }
 0x125   : > { %5068 = vst [vmem:[#allocation12_spill] sm:$0xff] %v4174_v51  ;;  %v3223_v52 = vpop.f32.mrf.mxu1  ;;  %v1781_v36 = vrot.slane %v4174_v51, 2  ;;  %v1572_v57 = vrot.slane %v4174_v51, 1  ;;  %v1392_v51 = vadd.f32 %v3217_v34, %v4094_v3  ;;  %v4187_v28 = vadd.f32 %v3303_v54, %v1391_v40 }
 0x126   : > { %v1159_v49 = vpop.f32.mrf.mxu0  ;;  %v1394_v34 = vadd.f32 %v3220_v44, %v4102_v7 }
 0x127   : > { %v838_v30 = vpop.f32.mrf.mxu1  ;;  %v1438_v42 = vadd.f32 %v1390_v56, %v1159_v49  ;;  %v1574_v46 = vsel %vm1571_vm2, %v1572_v57, %v1573_v55  ;;  %v1783_v53 = vsel %vm1780_vm3, %v1781_v36, %v1782_v59  ;;  %5069 = vst [vmem:[#allocation13_spill] sm:$0xff] %v4187_v28  ;;  %v1786_v54 = vrot.slane %v4187_v28, 2 }
 0x128   : > { %1652 = vrot.lane.b32.xlu0 %v1574_v46, %s3492_s8  ;;  %v3306_v63 = vpop.f32.mrf.mxu0  ;;  %v1395_v1 = vadd.f32 %v4098_v5, %v838_v30 }
 0x129   : > { %v3226_v32 = vpop.f32.mrf.mxu1  ;;  %v1575_v26 = vrot.slane %v1438_v42, 1  ;;  %v1784_v18 = vrot.slane %v1438_v42, 2  ;;  %v1441_v22 = vadd.f32 %v3306_v63, %v1393_v50  ;;  %v1577_v50 = vrot.slane %v4187_v28, 1 }
 0x12a   : > { %v1169_v38 = vpop.f32.mrf.mxu0 }
 0x12b   : > { %v848_v61 = vpop.f32.mrf.mxu1  ;;  %v4189_v56 = vadd.f32 %v1392_v51, %v1169_v38  ;;  %v1576_v36 = vsel %vm1571_vm2, %v1573_v55, %v1575_v26  ;;  %v1785_v3 = vsel %vm1780_vm3, %v1782_v59, %v1784_v18  ;;  %v1580_v40 = vrot.slane %v1441_v22, 1 }
 0x12c   : > { %1861 = vrot.lane.b32.xlu0 %v1783_v53, %s3493_s9  ;;  %v3309_v57 = vpop.f32.mrf.mxu0  ;;  %v1789_v42 = vrot.slane %v1441_v22, 2  ;;  %v1396_v59 = vadd.f32 %v3223_v52, %v4110_v11 }
 0x12d   : > { %v3229_v48 = vpop.f32.mrf.mxu1  ;;  %v1787_v49 = vrot.slane %v4189_v56, 2  ;;  %v1578_v51 = vrot.slane %v4189_v56, 1  ;;  %v4199_v5 = vadd.f32 %v3309_v57, %v1395_v1 }
 0x12e   : > { %v1179_v46 = vpop.f32.mrf.mxu0 }
 0x12f   : > { %v858_v30 = vpop.f32.mrf.mxu1  ;;  %v4202_v63 = vadd.f32 %v1394_v34, %v1179_v46  ;;  %v1579_v7 = vsel %vm1571_vm2, %v1577_v50, %v1578_v51  ;;  %v1581_v44 = vsel %vm1571_vm2, %v1578_v51, %v1580_v40  ;;  %v1788_v55 = vsel %vm1780_vm3, %v1786_v54, %v1787_v49 }
 0x130   : > { %1654 = vrot.lane.b32.xlu0 %v1576_v36, %s3492_s8  ;;  %v3312_v18 = vpop.f32.mrf.mxu0  ;;  %v1790_v22 = vsel %vm1780_vm3, %v1787_v49, %v1789_v42  ;;  %1656 = vrot.lane.b32.xlu1 %v1579_v7, %s3492_s8  ;;  %v1583_v1 = vrot.slane %v4199_v5, 1  ;;  %v1792_v57 = vrot.slane %v4199_v5, 2  ;;  %v1397_v51 = vadd.f32 %v4106_v9, %v848_v61 }
 0x131   : > { %v3232_v26 = vpop.f32.mrf.mxu1  ;;  %v1582_v53 = vrot.slane %v4202_v63, 1  ;;  %v1791_v38 = vrot.slane %v4202_v63, 2  ;;  %v1399_v54 = vadd.f32 %v4114_v13, %v858_v30  ;;  %v1398_v46 = vadd.f32 %v3226_v32, %v4118_v15 }
 0x132   : > { %v1189_v34 = vpop.f32.mrf.mxu0  ;;  %v4221_v50 = vadd.f32 %v3312_v18, %v1397_v51  ;;  %v1400_v32 = vadd.f32 %v3229_v48, %v4126_v19 }
 0x133   : > { %v868_v36 = vpop.f32.mrf.mxu1  ;;  %v1444_v40 = vadd.f32 %v1396_v59, %v1189_v34  ;;  %v1584_v52 = vsel %vm1571_vm2, %v1582_v53, %v1583_v1  ;;  %v1793_v42 = vsel %vm1780_vm3, %v1791_v38, %v1792_v57 }
 0x134   : > { %1863 = vrot.lane.b32.xlu0 %v1785_v3, %s3493_s9  ;;  %v3315_v11 = vpop.f32.mrf.mxu0  ;;  %1658 = vrot.lane.b32.xlu1 %v1581_v44, %s3492_s8  ;;  %v1401_v3 = vadd.f32 %v4122_v17, %v868_v36  ;;  %v1587_v18 = vrot.slane %v4221_v50, 1  ;;  %v1796_v17 = vrot.slane %v4221_v50, 2 }
 0x135   : > { %v3235_v49 = vpop.f32.mrf.mxu1  ;;  %v1585_v7 = vrot.slane %v1444_v40, 1  ;;  %v1794_v28 = vrot.slane %v1444_v40, 2  ;;  %v1447_v9 = vadd.f32 %v3315_v11, %v1399_v54 }
 0x136   : > { %v1199_v59 = vpop.f32.mrf.mxu0 }
 0x137   : > { %v878_v61 = vpop.f32.mrf.mxu1  ;;  %v4224_v13 = vadd.f32 %v1398_v46, %v1199_v59  ;;  %v1795_v38 = vsel %vm1780_vm3, %v1792_v57, %v1794_v28  ;;  %v1586_v15 = vsel %vm1571_vm2, %v1583_v1, %v1585_v7  ;;  %v1590_v36 = vrot.slane %v1447_v9, 1 }
 0x138   : > { %1660 = vrot.lane.b32.xlu0 %v1584_v52, %s3492_s8  ;;  %v3318_v53 = vpop.f32.mrf.mxu0  ;;  %1865 = vrot.lane.b32.xlu1 %v1788_v55, %s3493_s9  ;;  %v1799_v51 = vrot.slane %v1447_v9, 2  ;;  %v1402_v46 = vadd.f32 %v3232_v26, %v4134_v23 }
 0x139   : > { %v3238_v30 = vpop.f32.mrf.mxu1  ;;  %v1588_v44 = vrot.slane %v4224_v13, 1  ;;  %v1797_v34 = vrot.slane %v4224_v13, 2  ;;  %v4236_v40 = vadd.f32 %v3318_v53, %v1401_v3 }
 0x13a   : > { %v1209_v28 = vpop.f32.mrf.mxu0 }
 0x13b   : > { %v888_v54 = vpop.f32.mrf.mxu1  ;;  %v4238_v57 = vadd.f32 %v1400_v32, %v1209_v28  ;;  %v1591_v48 = vsel %vm1571_vm2, %v1588_v44, %v1590_v36  ;;  %v1589_v11 = vsel %vm1571_vm2, %v1587_v18, %v1588_v44  ;;  %v1798_v55 = vsel %vm1780_vm3, %v1796_v17, %v1797_v34 }
 0x13c   : > { %1869 = vrot.lane.b32.xlu0 %v1793_v42, %s3493_s9  ;;  %v3321_v19 = vpop.f32.mrf.mxu0  ;;  %v4245_v52 = vsel %vm1780_vm3, %v1797_v34, %v1799_v51  ;;  %1867 = vrot.lane.b32.xlu1 %v1790_v22, %s3493_s9  ;;  %v1593_v42 = vrot.slane %v4236_v40, 1  ;;  %v1802_v59 = vrot.slane %v4236_v40, 2  ;;  %v1403_v32 = vadd.f32 %v4130_v21, %v878_v61 }
 0x13d   : > { %v3241_v1 = vpop.f32.mrf.mxu1  ;;  %v1592_v7 = vrot.slane %v4238_v57, 1  ;;  %v1801_v9 = vrot.slane %v4238_v57, 2  ;;  %v1405_v44 = vadd.f32 %v4138_v25, %v888_v54  ;;  %v1404_v22 = vadd.f32 %v3235_v49, %v4142_v27 }
 0x13e   : > { %v1219_v53 = vpop.f32.mrf.mxu0  ;;  %v4259_v36 = vadd.f32 %v3321_v19, %v1403_v32  ;;  %v1406_v49 = vadd.f32 %v3238_v30, %v4150_v31 }
 0x13f   : > { %v898_v3 = vpop.f32.mrf.mxu1  ;;  %v1450_v18 = vadd.f32 %v1402_v46, %v1219_v53  ;;  %v1594_v26 = vsel %vm1571_vm2, %v1592_v7, %v1593_v42  ;;  %v1803_v17 = vsel %vm1780_vm3, %v1801_v9, %v1802_v59 }
 0x140   : > { %1871 = vrot.lane.b32.xlu0 %v1795_v38, %s3493_s9  ;;  %v3324_v23 = vpop.f32.mrf.mxu0  ;;  %1662 = vrot.lane.b32.xlu1 %v1586_v15, %s3492_s8  ;;  %v1407_v38 = vadd.f32 %v4146_v29, %v898_v3  ;;  %v1597_v19 = vrot.slane %v4259_v36, 1  ;;  %v1806_v29 = vrot.slane %v4259_v36, 2 }
 0x141   : > { %v3244_v34 = vpop.f32.mrf.mxu1  ;;  %v1595_v51 = vrot.slane %v1450_v18, 1  ;;  %v1804_v28 = vrot.slane %v1450_v18, 2  ;;  %v1453_v21 = vadd.f32 %v3324_v23, %v1405_v44 }
 0x142   : > { %v1229_v46 = vpop.f32.mrf.mxu0 }
 0x143   : > { %v908_v61 = vpop.f32.mrf.mxu1  ;;  %v4262_v25 = vadd.f32 %v1404_v22, %v1229_v46  ;;  %v1805_v9 = vsel %vm1780_vm3, %v1802_v59, %v1804_v28  ;;  %v1596_v27 = vsel %vm1571_vm2, %v1593_v42, %v1595_v51  ;;  %v1600_v3 = vrot.slane %v1453_v21, 1 }
 0x144   : > { %1664 = vrot.lane.b32.xlu0 %v1589_v11, %s3492_s8  ;;  %v3327_v7 = vpop.f32.mrf.mxu0  ;;  %1666 = vrot.lane.b32.xlu1 %v1591_v48, %s3492_s8  ;;  %v1809_v32 = vrot.slane %v1453_v21, 2  ;;  %v1408_v51 = vadd.f32 %v3241_v1, %v4156_v35 }
 0x145   : > { %5070 = vst [vmem:[#allocation14_spill] sm:$0xff] %v4262_v25  ;;  %v3247_v54 = vpop.f32.mrf.mxu1  ;;  %v1598_v15 = vrot.slane %v4262_v25, 1  ;;  %v1807_v53 = vrot.slane %v4262_v25, 2  ;;  %v4274_v11 = vadd.f32 %v3327_v7, %v1407_v38 }
 0x146   : > { %v1239_v59 = vpop.f32.mrf.mxu0 }
 0x147   : > { %v918_v18 = vpop.f32.mrf.mxu1  ;;  %v4276_v44 = vadd.f32 %v1406_v49, %v1239_v59  ;;  %v1601_v30 = vsel %vm1571_vm2, %v1598_v15, %v1600_v3  ;;  %v1599_v23 = vsel %vm1571_vm2, %v1597_v19, %v1598_v15  ;;  %v4282_v48 = vsel %vm1780_vm3, %v1806_v29, %v1807_v53 }
 0x148   : > { %1668 = vrot.lane.b32.xlu0 %v1594_v26, %s3492_s8  ;;  %v3330_v31 = vpop.f32.mrf.mxu0  ;;  %v4285_v22 = vsel %vm1780_vm3, %v1807_v53, %v1809_v32  ;;  %1873 = vrot.lane.b32.xlu1 %v1798_v55, %s3493_s9  ;;  %v1603_v26 = vrot.slane %v4274_v11, 1  ;;  %v1812_v46 = vrot.slane %v4274_v11, 2  ;;  %v1409_v49 = vadd.f32 %v4154_v33, %v908_v61 }
 0x149   : > { %v3250_v42 = vpop.f32.mrf.mxu1  ;;  %v1602_v28 = vrot.slane %v4276_v44, 1  ;;  %v1811_v21 = vrot.slane %v4276_v44, 2  ;;  %v1411_v15 = vadd.f32 %v4158_v37, %v918_v18  ;;  %v1410_v29 = vadd.f32 %v3244_v34, %v4160_v39 }
 0x14a   : > { %v1249_v7 = vpop.f32.mrf.mxu0  ;;  %v4301_v3 = vadd.f32 %v3330_v31, %v1409_v49 }
 0x14b   : > { %v928_v38 = vpop.f32.mrf.mxu1  ;;  %v1456_v19 = vadd.f32 %v1408_v51, %v1249_v7  ;;  %v1604_v1 = vsel %vm1571_vm2, %v1602_v28, %v1603_v26  ;;  %v1813_v55 = vsel %vm1780_vm3, %v1811_v21, %v1812_v46  ;;  %v1412_v28 = vadd.f32 %v3247_v54, %v4164_v43 }
 0x14c   : > { %1877 = vrot.lane.b32.xlu0 %v1803_v17, %s3493_s9  ;;  %v3333_v35 = vpop.f32.mrf.mxu0  ;;  %1875 = vrot.lane.b32.xlu1 %v4245_v52, %s3493_s9  ;;  %v1413_v17 = vadd.f32 %v4162_v41, %v928_v38  ;;  %v1607_v52 = vrot.slane %v4301_v3, 1  ;;  %v1816_v41 = vrot.slane %v4301_v3, 2 }
 0x14d   : > { %v4295_v53 = vpop.f32.mrf.mxu1  ;;  %v1605_v32 = vrot.slane %v1456_v19, 1  ;;  %v1814_v59 = vrot.slane %v1456_v19, 2  ;;  %v1459_v33 = vadd.f32 %v3333_v35, %v1411_v15 }
 0x14e   : > { %v1259_v61 = vpop.f32.mrf.mxu0 }
 0x14f   : > { %v4305_v37 = vpop.f32.mrf.mxu1  ;;  %v4307_v18 = vadd.f32 %v1410_v29, %v1259_v61  ;;  %v1815_v34 = vsel %vm1780_vm3, %v1812_v46, %v1814_v59  ;;  %v1606_v31 = vsel %vm1571_vm2, %v1603_v26, %v1605_v32  ;;  %v1610_v38 = vrot.slane %v1459_v33, 1 }
 0x150   : > { %1879 = vrot.lane.b32.xlu0 %v1805_v9, %s3493_s9  ;;  %v3336_v39 = vpop.f32.mrf.mxu0  ;;  %1670 = vrot.lane.b32.xlu1 %v1596_v27, %s3492_s8  ;;  %v1819_v49 = vrot.slane %v1459_v33, 2  ;;  %v1414_v32 = vadd.f32 %v3250_v42, %v4168_v47 }
 0x151   : > { %5071 = vst [vmem:[#allocation15_spill] sm:$0xff] %v4307_v18  ;;  %v4310_v51 = vpop.f32.mrf.mxu1  ;;  %v1608_v21 = vrot.slane %v4307_v18, 1  ;;  %v1817_v7 = vrot.slane %v4307_v18, 2  ;;  %v4321_v9 = vadd.f32 %v3336_v39, %v1413_v17 }
 0x152   : > { %v1269_v46 = vpop.f32.mrf.mxu0 }
 0x153   : > { %5072 = vst [vmem:[#allocation16_spill] sm:$0xff] %v4321_v9  ;;  %v948_v19 = vpop.f32.mrf.mxu1  ;;  %v4323_v15 = vadd.f32 %v1412_v28, %v1269_v46  ;;  %v1611_v54 = vsel %vm1571_vm2, %v1608_v21, %v1610_v38  ;;  %v1609_v35 = vsel %vm1571_vm2, %v1607_v52, %v1608_v21  ;;  %v1818_v27 = vsel %vm1780_vm3, %v1816_v41, %v1817_v7 }
 0x154   : > { %1672 = vrot.lane.b32.xlu0 %v1599_v23, %s3492_s8  ;;  %v3339_v43 = vpop.f32.mrf.mxu0  ;;  %v1820_v29 = vsel %vm1780_vm3, %v1817_v7, %v1819_v49  ;;  %1674 = vrot.lane.b32.xlu1 %v1601_v30, %s3492_s8  ;;  %v1613_v61 = vrot.slane %v4321_v9, 1  ;;  %v1822_v23 = vrot.slane %v4321_v9, 2 }
 0x155   : > { %5073 = vst [vmem:[#allocation17_spill] sm:$0xff] %v4323_v15  ;;  %v4325_v26 = vpop.f32.mrf.mxu1  ;;  %v1612_v59 = vrot.slane %v4323_v15, 1  ;;  %v1821_v33 = vrot.slane %v4323_v15, 2  ;;  %v1417_v15 = vadd.f32 %v4076_v58, %v948_v19 }
 0x156   : > { %v1279_v39 = vpop.f32.mrf.mxu0 }
 0x157   : > { %v958_v17 = vpop.f32.mrf.mxu1  ;;  %v1462_v28 = vadd.f32 %v1414_v32, %v1279_v39  ;;  %v1614_v47 = vsel %vm1571_vm2, %v1612_v59, %v1613_v61  ;;  %v1823_v42 = vsel %vm1780_vm3, %v1821_v33, %v1822_v23 }
 0x158   : > { %1676 = vrot.lane.b32.xlu0 %v1604_v1, %s3492_s8  ;;  %v3342_v21 = vpop.f32.mrf.mxu0  ;;  %1881 = vrot.lane.b32.xlu1 %v4282_v48, %s3493_s9 }
 0x159   : > { %v4338_v52 = vpop.f32.mrf.mxu1  ;;  %v1615_v7 = vrot.slane %v1462_v28, 1  ;;  %v1824_v41 = vrot.slane %v1462_v28, 2 }
 0x15a   : > { %v1289_v38 = vpop.f32.mrf.mxu0 }
 0x15b   : > { %v4345_v30 = vpop.f32.mrf.mxu1  ;;  %v1825_v1 = vsel %vm1780_vm3, %v1822_v23, %v1824_v41  ;;  %v1616_v32 = vsel %vm1571_vm2, %v1613_v61, %v1615_v7 }
 0x15c   : > { %1885 = vrot.lane.b32.xlu0 %v1813_v55, %s3493_s9  ;;  %v3345_v46 = vpop.f32.mrf.mxu0  ;;  %1883 = vrot.lane.b32.xlu1 %v4285_v22, %s3493_s9 }
 0x15d   : > { %v4347_v49 = vpop.f32.mrf.mxu1 }
 0x15e   : > { %v1299_v33 = vpop.f32.mrf.mxu0 }
 0x15f   : > { %v4354_v59 = vpop.f32.mrf.mxu1 }
 0x160   : > { %1887 = vrot.lane.b32.xlu0 %v1815_v34, %s3493_s9  ;;  %v4359_v48 = vpop.f32.mrf.mxu0  ;;  %1678 = vrot.lane.b32.xlu1 %v1606_v31, %s3492_s8  ;;  %v1416_v34 = vadd.f32 %v4295_v53, %v4080_v60  ;;  %v1418_v60 = vadd.f32 %v4310_v51, %v4088_v0 }
 0x161   : > { %v4356_v39 = vpop.f32.mrf.mxu1 }
 0x162   : > { %v1309_v28 = vpop.f32.mrf.mxu0  ;;  %v4399_v58 = vadd.f32 %v1418_v60, %v1299_v33 }
 0x163   : > { %v4362_v55 = vpop.f32.mrf.mxu1 }
 0x164   : > { %1680 = vrot.lane.b32.xlu0 %v1609_v35, %s3492_s8  ;;  %v4367_v61 = vpop.f32.mrf.mxu0  ;;  %1682 = vrot.lane.b32.xlu1 %v1611_v54, %s3492_s8  ;;  %v1415_v35 = vadd.f32 %v4166_v45, %v4305_v37  ;;  %v4384_v54 = vadd.f32 %v1416_v34, %v1289_v38  ;;  %v1419_v45 = vadd.f32 %v4084_v62, %v958_v17  ;;  %v1622_v62 = vrot.slane %v4399_v58, 1 }
 0x165   : > { %v4364_v23 = vpop.f32.mrf.mxu1  ;;  %v1422_v34 = vadd.f32 %v4338_v52, %v4104_v8  ;;  %v1831_v60 = vrot.slane %v4399_v58, 2 }
 0x166   : > { %v1319_v7 = vpop.f32.mrf.mxu0  ;;  %v4392_v53 = vadd.f32 %v3339_v43, %v1415_v35  ;;  %v1618_v37 = vrot.slane %v4384_v54, 1  ;;  %v4405_v51 = vadd.f32 %v3345_v46, %v1419_v45  ;;  %v1420_v46 = vadd.f32 %v4325_v26, %v4096_v4 }
 0x167   : > { %v4370_v22 = vpop.f32.mrf.mxu1  ;;  %v1421_v4 = vadd.f32 %v4092_v2, %v4345_v30  ;;  %v4430_v26 = vadd.f32 %v1422_v34, %v1319_v7 }
 0x168   : > { %1684 = vrot.lane.b32.xlu0 %v1614_v47, %s3492_s8  ;;  %1889 = vrot.lane.b32.xlu1 %v1818_v27, %s3493_s9  ;;  %v4378_v31 = vpop.f32.mrf.mxu0  ;;  %v1465_v47 = vadd.f32 %v3342_v21, %v1417_v15  ;;  %v1617_v0 = vrot.slane %v4392_v53, 1  ;;  %v1827_v21 = vrot.slane %v4384_v54, 2  ;;  %v1826_v33 = vrot.slane %v4392_v53, 2 }
 0x169   : > { %v4372_v41 = vpop.f32.mrf.mxu1  ;;  %v1468_v45 = vadd.f32 %v1420_v46, %v1309_v28  ;;  %v4439_v28 = vadd.f32 %v4359_v48, %v1421_v4  ;;  %v1628_v30 = vrot.slane %v4430_v26, 1  ;;  %v1425_v48 = vadd.f32 %v4108_v10, %v4362_v55 }
 0x16a   : > { %v1329_v27 = vpop.f32.mrf.mxu0  ;;  %v1620_v15 = vrot.slane %v1465_v47, 1  ;;  %v1619_v17 = vsel %vm1571_vm2, %v1617_v0, %v1618_v37  ;;  %v1828_v0 = vsel %vm1780_vm3, %v1826_v33, %v1827_v21  ;;  %v1829_v52 = vrot.slane %v1465_v47, 2 }
 0x16b   : > { %v4380_v9 = vpop.f32.mrf.mxu1  ;;  %v1627_v47 = vrot.slane %v4439_v28, 1  ;;  %v1834_v33 = vrot.slane %v1468_v45, 2  ;;  %v1836_v10 = vrot.slane %v4439_v28, 2 }
 0x16c   : > { %1893 = vrot.lane.b32.xlu0 %v1823_v42, %s3493_s9  ;;  %1891 = vrot.lane.b32.xlu1 %v1820_v29, %s3493_s9  ;;  %v4407_v43 = vpop.f32.mrf.mxu0  ;;  %v1621_v38 = vsel %vm1571_vm2, %v1618_v37, %v1620_v15  ;;  %v1830_v7 = vsel %vm1780_vm3, %v1827_v21, %v1829_v52  ;;  %v1423_v21 = vadd.f32 %v4100_v6, %v4354_v59 }
 0x16d   : > { %v4387_v25 = vpop.f32.mrf.mxu1 }
 0x16e   : > { %v1471_v55 = vadd.f32 %v4367_v61, %v1423_v21  ;;  %v5075_v21 = vld [vmem:[#allocation5_spill] sm:$0xff] }
 0x16f   : > { %v4395_v18 = vpop.f32.mrf.mxu1 }
 0x170   : > { %1895 = vrot.lane.b32.xlu0 %v1825_v1, %s3493_s9  ;;  %1686 = vrot.lane.b32.xlu1 %v1616_v32, %s3492_s8  ;;  %v1623_v1 = vrot.slane %v4405_v51, 1  ;;  %v1339_v32 = vpop.f32.mrf.mxu0  ;;  %v1630_v61 = vrot.slane %v1471_v55, 1 }
 0x171   : > { %v4401_v19 = vpop.f32.mrf.mxu1 }
 0x172   : > { %v1624_v37 = vsel %vm1571_vm2, %v1622_v62, %v1623_v1  ;;  %v4435_v8 = vpop.f32.mrf.mxu0 }
 0x173   : > { %v4410_v29 = vpop.f32.mrf.mxu1 }
 0x174   : > { %1688 = vrot.lane.b32.xlu0 %v1619_v17, %s3492_s8  ;;  %1690 = vrot.lane.b32.xlu1 %v1621_v38, %s3492_s8  ;;  %v1832_v17 = vrot.slane %v4405_v51, 2  ;;  %v1424_v38 = vadd.f32 %v4347_v49, %v4112_v12  ;;  %v1349_v46 = vpop.f32.mrf.mxu0  ;;  %v1629_v12 = vsel %vm1571_vm2, %v1627_v47, %v1628_v30  ;;  %v4460_v49 = vadd.f32 %v4378_v31, %v1425_v48 }
 0x175   : > { %v3283_v42 = vpop.f32.mrf.mxu1 }
 0x176   : > { %v1625_v42 = vrot.slane %v1468_v45, 1  ;;  %v1833_v2 = vsel %vm1780_vm3, %v1831_v60, %v1832_v17  ;;  %v4451_v34 = vadd.f32 %v1424_v38, %v1329_v27  ;;  %v3363_v4 = vpop.f32.mrf.mxu0  ;;  %v1835_v6 = vsel %vm1780_vm3, %v1832_v17, %v1834_v33 }
 0x177   : > { %v4424_v35 = vpop.f32.mrf.mxu1  ;;  %v1633_v31 = vrot.slane %v4460_v49, 1 }
 0x178   : > { %1692 = vrot.lane.b32.xlu0 %v1624_v37, %s3492_s8  ;;  %1897 = vrot.lane.b32.xlu1 %v1828_v0, %s3493_s9  ;;  %v1626_v60 = vsel %vm1571_vm2, %v1623_v1, %v1625_v42  ;;  %v1837_v37 = vrot.slane %v4430_v26, 2  ;;  %v1632_v27 = vrot.slane %v4451_v34, 1  ;;  %v1426_v1 = vadd.f32 %v4356_v39, %v4120_v16  ;;  %v1359_v45 = vpop.f32.mrf.mxu0 }
 0x179   : > { %v3286_v15 = vpop.f32.mrf.mxu1  ;;  %v1428_v0 = vadd.f32 %v4364_v23, %v4128_v20  ;;  %v1631_v16 = vsel %vm1571_vm2, %v1628_v30, %v1630_v61  ;;  %v1842_v39 = vrot.slane %v4460_v49, 2  ;;  %v1839_v20 = vrot.slane %v1471_v55, 2 }
 0x17a   : > { %v1838_v59 = vsel %vm1780_vm3, %v1836_v10, %v1837_v37  ;;  %v1841_v15 = vrot.slane %v4451_v34, 2  ;;  %v1474_v52 = vadd.f32 %v1426_v1, %v1339_v32  ;;  %v1634_v17 = vsel %vm1571_vm2, %v1632_v27, %v1633_v31 }
 0x17b   : > { %v1047_v62 = vpop.f32.mrf.mxu1  ;;  %v4479_v42 = vadd.f32 %v1428_v0, %v1349_v46  ;;  %v1430_v30 = vadd.f32 %v4372_v41, %v4136_v24 }
 0x17c   : > { %1901 = vrot.lane.b32.xlu0 %v1833_v2, %s3493_s9  ;;  %1899 = vrot.lane.b32.xlu1 %v1830_v7, %s3493_s9  ;;  %v1427_v62 = vadd.f32 %v4116_v14, %v4370_v22  ;;  %v3366_v2 = vpop.f32.mrf.mxu0  ;;  %v1635_v32 = vrot.slane %v1474_v52, 1  ;;  %v1843_v7 = vsel %vm1780_vm3, %v1841_v15, %v1842_v39  ;;  %v1840_v22 = vsel %vm1780_vm3, %v1837_v37, %v1839_v20 }
 0x17d   : > { %v1638_v14 = vrot.slane %v4479_v42, 1  ;;  %v1844_v48 = vrot.slane %v1474_v52, 2  ;;  %v4498_v33 = vadd.f32 %v1430_v30, %v1359_v45  ;;  %v1429_v37 = vadd.f32 %v5075_v21, %v4380_v9  ;;  %v5077_v45 = vld [vmem:[#allocation10_spill] sm:$0xff] }
 0x17e   : > { %v4486_v23 = vadd.f32 %v4407_v43, %v1427_v62  ;;  %v1369_v38 = vpop.f32.mrf.mxu0  ;;  %v5074_v43 = vld [vmem:[#allocation6_spill] sm:$0xff]  ;;  %v1434_v0 = vadd.f32 %v4401_v19, %v5077_v45 }
 0x17f   : > { %v1431_v47 = vadd.f32 %v5074_v43, %v4395_v18  ;;  %v1477_v55 = vadd.f32 %v4435_v8, %v1429_v37  ;;  %v1642_v27 = vrot.slane %v4498_v33, 1  ;;  %v1851_v61 = vrot.slane %v4498_v33, 2  ;;  %v5080_v37 = vld [vmem:[#allocation11_spill] sm:$0xff] }
 0x180   : > { %1694 = vrot.lane.b32.xlu0 %v1626_v60, %s3492_s8  ;;  %1696 = vrot.lane.b32.xlu1 %v1629_v12, %s3492_s8  ;;  %v1637_v46 = vrot.slane %v4486_v23, 1  ;;  %v1636_v60 = vsel %vm1571_vm2, %v1633_v31, %v1635_v32  ;;  %v1847_v12 = vrot.slane %v4479_v42, 2  ;;  %v3369_v10 = vpop.f32.mrf.mxu0  ;;  %v1846_v18 = vrot.slane %v4486_v23, 2 }
 0x181   : > { %v4506_v41 = vadd.f32 %v3363_v4, %v1431_v47  ;;  %v1640_v8 = vrot.slane %v1477_v55, 1  ;;  %v1849_v19 = vrot.slane %v1477_v55, 2  ;;  %v5079_v47 = vld [vmem:[#allocation9_spill] sm:$0xff] }
 0x182   : > { %v1639_v24 = vsel %vm1571_vm2, %v1637_v46, %v1638_v14  ;;  %v1848_v9 = vsel %vm1780_vm3, %v1846_v18, %v1847_v12  ;;  %v1379_v31 = vpop.f32.mrf.mxu0 }
 0x183   : > { %v1643_v4 = vrot.slane %v4506_v41, 1 }
 0x184   : > { %1903 = vrot.lane.b32.xlu0 %v1835_v6, %s3493_s9  ;;  %1905 = vrot.lane.b32.xlu1 %v1838_v59, %s3493_s9  ;;  %v1845_v6 = vsel %vm1780_vm3, %v1842_v39, %v1844_v48  ;;  %v5076_v59 = vld [vmem:[#allocation8_spill] sm:$0xff]  ;;  %v1852_v39 = vrot.slane %v4506_v41, 2  ;;  %v1435_v48 = vadd.f32 %v5079_v47, %v4424_v35 }
 0x185   : > { %v1432_v1 = vadd.f32 %v4387_v25, %v5076_v59  ;;  %v1644_v52 = vsel %vm1571_vm2, %v1642_v27, %v1643_v4  ;;  %v1641_v25 = vsel %vm1571_vm2, %v1638_v14, %v1640_v8 }
 0x186   : > { %v1483_v18 = vadd.f32 %v3369_v10, %v1435_v48  ;;  %v3494_v48 = vmov 1983009808  }
 0x187   : > { %v1480_v15 = vadd.f32 %v1432_v1, %v1369_v38  ;;  %v4542_v38 = vld [vmem:[%s5050_s2] ss:$0 sm:$0xff] }
 0x188   : > { %1700 = vrot.lane.b32.xlu0 %v1634_v17, %s3492_s8  ;;  %1698 = vrot.lane.b32.xlu1 %v1631_v16, %s3492_s8  ;;  %v5078_v17 = vld [vmem:[#allocation7_spill] sm:$0xff]  ;;  %v4525_v16 = vadd.f32 %v1434_v0, %v1379_v31  ;;  %v1650_v59 = vrot.slane %v1483_v18, 1  ;;  %v1859_v8 = vrot.slane %v1483_v18, 2  ;;  %v1496_v47 = vadd.f32 %v4542_v38, %v4199_v5 }
 0x189   : > { %v1433_v62 = vadd.f32 %v5078_v17, %v4410_v29  ;;  %v1850_v29 = vsel %vm1780_vm3, %v1847_v12, %v1849_v19  ;;  %v1854_v46 = vrot.slane %v1480_v15, 2  ;;  %v1492_v12 = vadd.f32 %v4542_v38, %v5080_v37 }
 0x18a   : > { %v1648_v30 = vrot.slane %v4525_v16, 1  ;;  %v1497_v5 = vadd.f32 %v4542_v38, %v4221_v50 }
 0x18b   : > { %v4531_v20 = vadd.f32 %v3366_v2, %v1433_v62  ;;  %v1495_v62 = vadd.f32 %v4542_v38, %v4202_v63  ;;  %v1994_v63 = vlaneseq }
 0x18c   : > { %1909 = vrot.lane.b32.xlu0 %v1843_v7, %s3493_s9  ;;  %1907 = vrot.lane.b32.xlu1 %v1840_v22, %s3493_s9  ;;  %v1645_v7 = vrot.slane %v1480_v15, 1  ;;  %v1853_v22 = vsel %vm1780_vm3, %v1851_v61, %v1852_v39  ;;  %v1651_v0 = vsel %vm1571_vm2, %v1648_v30, %v1650_v59  ;;  %v5081_v15 = vld [vmem:[#allocation12_spill] sm:$0xff] }
 0x18d   : > { %v1647_v14 = vrot.slane %v4531_v20, 1  ;;  %v4572_v18 = vshrl.u32 %v1994_v63, 7 }
 0x18e   : > { %v1646_v43 = vsel %vm1571_vm2, %v1643_v4, %v1645_v7  ;;  %v1494_v4 = vadd.f32 %v4542_v38, %v4189_v56 }
 0x18f   : > { %v1649_v21 = vsel %vm1571_vm2, %v1647_v14, %v1648_v30  ;;  %vm2695_vm2 = vcmask 982016  }
 0x190   : > { %1702 = vrot.lane.b32.xlu0 %v1636_v60, %s3492_s8  ;;  %1704 = vrot.lane.b32.xlu1 %v1639_v24, %s3492_s8  ;;  %v1857_v60 = vrot.slane %v4525_v16, 2  ;;  %v1856_v24 = vrot.slane %v4531_v20, 2 }
 0x192   : > { %v1858_v35 = vsel %vm1780_vm3, %v1856_v24, %v1857_v60 }
 0x194   : > { %1911 = vrot.lane.b32.xlu0 %v1845_v6, %s3493_s9  ;;  %1913 = vrot.lane.b32.xlu1 %v1848_v9, %s3493_s9  ;;  %v1855_v9 = vsel %vm1780_vm3, %v1852_v39, %v1854_v46 }
 0x198   : > { %1708 = vrot.lane.b32.xlu0 %v1644_v52, %s3492_s8  ;;  %1706 = vrot.lane.b32.xlu1 %v1641_v25, %s3492_s8  ;;  %v1491_v52 = vadd.f32 %v4542_v38, %v5081_v15  ;;  %v1860_v25 = vsel %vm1780_vm3, %v1857_v60, %v1859_v8  ;;  %v1498_v8 = vadd.f32 %v4542_v38, %v4224_v13 }
 0x19a   : > { %v1653_v32 = vpop.permute.xlu0 %1652 }
 0x19b   : > { %v1748_v56 = vadd.f32 %v1653_v32, %v1491_v52 }
 0x19c   : > { %1917 = vrot.lane.b32.xlu0 %v1853_v22, %s3493_s9  ;;  %1915 = vrot.lane.b32.xlu1 %v1850_v29, %s3493_s9 }
 0x19e   : > { %v1862_v2 = vpop.permute.xlu0 %1861 }
 0x19f   : > { %v1957_v7 = vadd.f32 %v1862_v2, %v1748_v56 }
 0x1a0   : > { %1710 = vrot.lane.b32.xlu0 %v1646_v43, %s3492_s8  ;;  %1712 = vrot.lane.b32.xlu1 %v1649_v21, %s3492_s8  ;;  %v1992_v21 = vunpack.c.l.s4 %v3494_v48 }
 0x1a2   : > { %v1655_v55 = vpop.permute.xlu0 %1654  ;;  %v1657_v6 = vpop.permute.xlu1 %1656  ;;  %v1993_v24 = vunpack.c.0.s8 %v1992_v21 }
 0x1a3   : > { %v1749_v27 = vadd.f32 %v1655_v55, %v1492_v12  ;;  %v5082_v55 = vld [vmem:[#allocation13_spill] sm:$0xff] }
 0x1a4   : > { %1919 = vrot.lane.b32.xlu0 %v1855_v9, %s3493_s9  ;;  %1921 = vrot.lane.b32.xlu1 %v1858_v35, %s3493_s9 }
 0x1a6   : > { %v1864_v1 = vpop.permute.xlu0 %1863  ;;  %v1659_v45 = vpop.permute.xlu1 %1658 }
 0x1a7   : > { %v4560_v31 = vadd.f32 %v1864_v1, %v1749_v27  ;;  %v1751_v10 = vadd.f32 %v1659_v45, %v1494_v4  ;;  %v1493_v27 = vadd.f32 %v4542_v38, %v5082_v55  ;;  %v4581_v45 = vsub.s32 %v1993_v24, %v4572_v18 }
 0x1a8   : > { %1714 = vrot.lane.b32.xlu1 %v1651_v0, %s3492_s8  ;;  %v1499_v55 = vadd.f32 %v4542_v38, %v4238_v57  ;;  %v1504_v57 = vadd.f32 %v4542_v38, %v4274_v11 }
 0x1a9   : > { %v1750_v59 = vadd.f32 %v1657_v6, %v1493_v27 }
 0x1aa   : > { %v1661_v61 = vpop.permute.xlu0 %1660  ;;  %v1866_v17 = vpop.permute.xlu1 %1865 }
 0x1ab   : > { %v1752_v39 = vadd.f32 %v1661_v61, %v1495_v62  ;;  %v1959_v0 = vadd.f32 %v1866_v17, %v1750_v59 }
 0x1ac   : > { %1923 = vrot.lane.b32.xlu1 %v1860_v25, %s3493_s9 }
 0x1ae   : > { %v1870_v19 = vpop.permute.xlu0 %1869  ;;  %v1868_v22 = vpop.permute.xlu1 %1867 }
 0x1af   : > { %v1961_v30 = vadd.f32 %v1870_v19, %v1752_v39  ;;  %v1960_v29 = vadd.f32 %v1868_v22, %v1751_v10 }
 0x1b1   : > { %v1989_v14 = vcombine.low %v1957_v7, %v1961_v30  ;;  %v1990_v46 = vcombine.high %v1957_v7, %v1961_v30 }
 0x1b2   : > { %v1872_v43 = vpop.permute.xlu0 %1871  ;;  %v1663_v37 = vpop.permute.xlu1 %1662 }
 0x1b3   : > { %v1753_v60 = vadd.f32 %v1663_v37, %v1496_v47  ;;  %v4589_v6 = vrot.slane %v1990_v46, %v4581_v45 }
 0x1b5   : > { %v1962_v32 = vadd.f32 %v1872_v43, %v1753_v60 }
 0x1b6   : > { %v1665_v12 = vpop.permute.xlu0 %1664  ;;  %v1667_v2 = vpop.permute.xlu1 %1666 }
 0x1b7   : > { %v2261_v9 = vcombine.low %v4560_v31, %v1962_v32  ;;  %v2262_v35 = vcombine.high %v4560_v31, %v1962_v32  ;;  %v1754_v1 = vadd.f32 %v1665_v12, %v1497_v5  ;;  %v1755_v15 = vadd.f32 %v1667_v2, %v1498_v8 }
 0x1b8   : > { %v4586_v31 = vrot.slane %v1989_v14, %v4581_v45  ;;  %v1500_v8 = vadd.f32 %v4542_v38, %v4236_v40 }
 0x1b9   : > { %v4606_v47 = vrot.slane %v2261_v9, %v4581_v45  ;;  %v4609_v48 = vrot.slane %v2262_v35, %v4581_v45  ;;  %v1503_v9 = vadd.f32 %v4542_v38, %v4276_v44 }
 0x1ba   : > { %v1669_v4 = vpop.permute.xlu0 %1668  ;;  %v1874_v10 = vpop.permute.xlu1 %1873 }
 0x1bb   : > { %v1963_v61 = vadd.f32 %v1874_v10, %v1754_v1  ;;  %v1756_v35 = vadd.f32 %v1669_v4, %v1499_v55 }
 0x1bd   : > { %v2005_v52 = vcombine.low %v1959_v0, %v1963_v61  ;;  %v2006_v62 = vcombine.high %v1959_v0, %v1963_v61 }
 0x1be   : > { %v1878_v25 = vpop.permute.xlu0 %1877  ;;  %v1876_v50 = vpop.permute.xlu1 %1875 }
 0x1bf   : > { %v4592_v56 = vrot.slane %v2005_v52, %v4581_v45  ;;  %v4595_v17 = vrot.slane %v2006_v62, %v4581_v45  ;;  %v1964_v39 = vadd.f32 %v1876_v50, %v1755_v15  ;;  %v1965_v1 = vadd.f32 %v1878_v25, %v1756_v35 }
 0x1c1   : > { %v2053_v13 = vcombine.low %v4586_v31, %v4592_v56  ;;  %v2054_v19 = vcombine.high %v4586_v31, %v4592_v56  ;;  %v2069_v7 = vcombine.low %v4589_v6, %v4595_v17  ;;  %v2070_v22 = vcombine.high %v4589_v6, %v4595_v17 }
 0x1c2   : > { %v1880_v30 = vpop.permute.xlu0 %1879  ;;  %v2277_v14 = vcombine.low %v1960_v29, %v1964_v39  ;;  %v2278_v46 = vcombine.high %v1960_v29, %v1964_v39  ;;  %v1671_v43 = vpop.permute.xlu1 %1670  ;;  %v3495_v39 = vmov 1934713408  }
 0x1c3   : > { %v1757_v52 = vadd.f32 %v1671_v43, %v1500_v8  ;;  %v1505_v43 = vadd.f32 %v4542_v38, %v4301_v3  ;;  %v5083_v8 = vld [vmem:[#allocation15_spill] sm:$0xff]  ;;  %v5086_v3 = vld [vmem:[#allocation16_spill] sm:$0xff] }
 0x1c4   : > { %v4612_v21 = vrot.slane %v2277_v14, %v4581_v45  ;;  %v4615_v63 = vrot.slane %v2278_v46, %v4581_v45  ;;  %v2056_v14 = vunpack.c.l.s4 %v3495_v39 }
 0x1c5   : > { %v1966_v4 = vadd.f32 %v1880_v30, %v1757_v52  ;;  %v1506_v52 = vadd.f32 %v4542_v38, %v5083_v8 }
 0x1c6   : > { %v1673_v37 = vpop.permute.xlu0 %1672  ;;  %v2325_v60 = vcombine.low %v4606_v47, %v4612_v21  ;;  %v2326_v29 = vcombine.high %v4606_v47, %v4612_v21  ;;  %v2341_v32 = vcombine.low %v4609_v48, %v4615_v63  ;;  %v2342_v12 = vcombine.high %v4609_v48, %v4615_v63  ;;  %v1675_v24 = vpop.permute.xlu1 %1674 }
 0x1c7   : > { %v2057_v55 = vunpack.c.0.s8 %v2056_v14 }
 0x1ca   : > { %v1677_v2 = vpop.permute.xlu0 %1676  ;;  %v1882_v27 = vpop.permute.xlu1 %1881 }
 0x1cb   : > { %v1760_v5 = vadd.f32 %v1677_v2, %v1503_v9  ;;  %v1501_v9 = vadd.f32 %v4542_v38, %v4259_v36 }
 0x1ce   : > { %v1886_v59 = vpop.permute.xlu0 %1885  ;;  %v1884_v10 = vpop.permute.xlu1 %1883 }
 0x1cf   : > { %v1969_v0 = vadd.f32 %v1886_v59, %v1760_v5  ;;  %v1758_v5 = vadd.f32 %v1673_v37, %v1501_v9  ;;  %v1508_v37 = vadd.f32 %v4542_v38, %v5086_v3 }
 0x1d1   : > { %v2021_v61 = vcombine.low %v1965_v1, %v1969_v0  ;;  %v2022_v15 = vcombine.high %v1965_v1, %v1969_v0  ;;  %v4640_v0 = vsub.s32 %v2057_v55, %v4572_v18  ;;  %v1967_v30 = vadd.f32 %v1882_v27, %v1758_v5 }
 0x1d2   : > { %v1888_v62 = vpop.permute.xlu0 %1887  ;;  %v1679_v50 = vpop.permute.xlu1 %1678  ;;  %v1510_v27 = vadd.f32 %v4542_v38, %v4384_v54 }
 0x1d3   : > { %v1761_v44 = vadd.f32 %v1679_v50, %v1504_v57  ;;  %v5084_v57 = vld [vmem:[#allocation14_spill] sm:$0xff]  ;;  %v5085_v50 = vld [vmem:[#allocation17_spill] sm:$0xff]  ;;  %v4661_v9 = vrot.slane %v2053_v13, %v4640_v0  ;;  %v4686_v13 = vrot.slane %v2070_v22, %v4640_v0  ;;  %v4739_v47 = vrot.slane %v2341_v32, %v4640_v0 }
 0x1d4   : > { %v1502_v36 = vadd.f32 %v4542_v38, %v5084_v57  ;;  %v4648_v39 = vadd.f32 %v4542_v38, %v5085_v50 }
 0x1d5   : > { %v1970_v46 = vadd.f32 %v1888_v62, %v1761_v44 }
 0x1d6   : > { %v1681_v2 = vpop.permute.xlu0 %1680  ;;  %v1683_v25 = vpop.permute.xlu1 %1682 }
 0x1d7   : > { %v2293_v40 = vcombine.low %v1966_v4, %v1970_v46  ;;  %v2294_v35 = vcombine.high %v1966_v4, %v1970_v46  ;;  %v1762_v59 = vadd.f32 %v1681_v2, %v1505_v43  ;;  %v1763_v14 = vadd.f32 %v1683_v25, %v1506_v52 }
 0x1d8   : > { %v1759_v46 = vadd.f32 %v1675_v24, %v1502_v36  ;;  %v2029_v2 = vrot.slane %v2021_v61, %v4581_v45  ;;  %v4665_v25 = vadd.f32 %v4542_v38, %v4399_v58  ;;  %v2036_v43 = vrot.slane %v2022_v15, %v4581_v45 }
 0x1d9   : > { %v4674_v61 = vrot.slane %v2054_v19, %v4640_v0  ;;  %v4680_v58 = vrot.slane %v2069_v7, %v4640_v0  ;;  %v2301_v31 = vrot.slane %v2293_v40, %v4581_v45  ;;  %v4693_v7 = vrot.slane %v2325_v60, %v4640_v0 }
 0x1da   : > { %v4637_v11 = vpop.permute.xlu0 %1684  ;;  %v1890_v1 = vpop.permute.xlu1 %1889  ;;  %v2308_v40 = vrot.slane %v2294_v35, %v4581_v45 }
 0x1db   : > { %v1971_v62 = vadd.f32 %v1890_v1, %v1762_v59  ;;  %v1968_v59 = vadd.f32 %v1884_v10, %v1759_v46 }
 0x1dd   : > { %v2037_v44 = vcombine.low %v1967_v30, %v1971_v62  ;;  %v2038_v4 = vcombine.high %v1967_v30, %v1971_v62 }
 0x1de   : > { %v4652_v18 = vpop.permute.xlu0 %1893  ;;  %v1892_v55 = vpop.permute.xlu1 %1891 }
 0x1df   : > { %v2045_v5 = vrot.slane %v2037_v44, %v4581_v45  ;;  %v2052_v54 = vrot.slane %v2038_v4, %v4581_v45  ;;  %v1972_v24 = vadd.f32 %v1892_v55, %v1763_v14 }
 0x1e1   : > { %v2085_v15 = vcombine.low %v2029_v2, %v2045_v5  ;;  %v2086_v10 = vcombine.high %v2029_v2, %v2045_v5  ;;  %v2101_v1 = vcombine.low %v2036_v43, %v2052_v54  ;;  %v2102_v30 = vcombine.high %v2036_v43, %v2052_v54 }
 0x1e2   : > { %v1896_v8 = vpop.permute.xlu0 %1895  ;;  %v2309_v56 = vcombine.low %v1968_v59, %v1972_v24  ;;  %v2310_v19 = vcombine.high %v1968_v59, %v1972_v24  ;;  %v1687_v52 = vpop.permute.xlu1 %1686  ;;  %v4723_v24 = vrot.slane %v2326_v29, %v4640_v0 }
 0x1e3   : > { %v1765_v62 = vadd.f32 %v1687_v52, %v1508_v37  ;;  %v4696_v6 = vrot.slane %v2085_v15, %v4640_v0  ;;  %v2100_v17 = vrot.slane %v2086_v10, %v4640_v0  ;;  %v4700_v22 = vrot.slane %v2101_v1, %v4640_v0 }
 0x1e4   : > { %v2317_v57 = vrot.slane %v2309_v56, %v4581_v45  ;;  %v2324_v36 = vrot.slane %v2310_v19, %v4581_v45  ;;  %v4706_v50 = vrot.slane %v2102_v30, %v4640_v0 }
 0x1e5   : > { %v4708_v60 = vadd.f32 %v1896_v8, %v1765_v62  ;;  %v2118_v37 = vcombine.high %v4661_v9, %v4696_v6  ;;  %v2119_v14 = vcombine.low %v4674_v61, %v2100_v17  ;;  %v2120_v44 = vcombine.high %v4674_v61, %v2100_v17 }
 0x1e6   : > { %v1689_v3 = vpop.permute.xlu0 %1688  ;;  %v2357_v4 = vcombine.low %v2301_v31, %v2317_v57  ;;  %v2358_v46 = vcombine.high %v2301_v31, %v2317_v57  ;;  %v2373_v35 = vcombine.low %v2308_v40, %v2324_v36  ;;  %v2374_v2 = vcombine.high %v2308_v40, %v2324_v36  ;;  %v1691_v55 = vpop.permute.xlu1 %1690 }
 0x1e7   : > { %v1767_v43 = vadd.f32 %v1691_v55, %v1510_v27  ;;  %2535 = vrot.lane.b32.xlu0 %v2118_v37, %s3496_s17  ;;  %v2121_v5 = vcombine.low %v4680_v58, %v4700_v22  ;;  %v2122_v54 = vcombine.high %v4680_v58, %v4700_v22  ;;  %v2123_v59 = vcombine.low %v4686_v13, %v4706_v50 }
 0x1e8   : > { %v2124_v27 = vcombine.high %v4686_v13, %v4706_v50  ;;  %v4730_v61 = vrot.slane %v2357_v4, %v4640_v0  ;;  %v4733_v15 = vrot.slane %v2358_v46, %v4640_v0  ;;  %v4742_v21 = vrot.slane %v2373_v35, %v4640_v0 }
 0x1e9   : > { %v4745_v29 = vrot.slane %v2374_v2, %v4640_v0  ;;  %v2117_v58 = vcombine.low %v4661_v9, %v4696_v6  ;;  %v4759_v31 = vrot.slane %v2342_v12, %v4640_v0  ;;  %v1764_v62 = vadd.f32 %v4637_v11, %v4648_v39 }
 0x1ea   : > { %v1693_v10 = vpop.permute.xlu0 %1692  ;;  %v1898_v1 = vpop.permute.xlu1 %1897  ;;  %v2389_v30 = vcombine.low %v4693_v7, %v4730_v61  ;;  %v2390_v8 = vcombine.high %v4693_v7, %v4730_v61  ;;  %v2391_v32 = vcombine.low %v4723_v24, %v4733_v15  ;;  %v2392_v56 = vcombine.high %v4723_v24, %v4733_v15 }
 0x1eb   : > { %2543 = vrot.lane.b32.xlu0 %v2119_v14, %s3497_s19  ;;  %v2393_v19 = vcombine.low %v4739_v47, %v4742_v21  ;;  %v2394_v52 = vcombine.high %v4739_v47, %v4742_v21  ;;  %v1768_v17 = vadd.f32 %v1693_v10, %v4665_v25  ;;  %v2395_v48 = vcombine.low %v4759_v31, %v4745_v29 }
 0x1ec   : > { %v2396_v63 = vcombine.high %v4759_v31, %v4745_v29  ;;  %v1973_v22 = vadd.f32 %v4652_v18, %v1764_v62  ;;  %v1512_v39 = vadd.f32 %v4542_v38, %v4405_v51  ;;  %v1509_v4 = vadd.f32 %v4542_v38, %v4392_v53 }
 0x1ed   : > { %v1513_v46 = vadd.f32 %v4542_v38, %v4439_v28 }
 0x1ee   : > { %v1902_v12 = vpop.permute.xlu0 %1901  ;;  %v1900_v40 = vpop.permute.xlu1 %1899  ;;  %v1766_v35 = vadd.f32 %v1689_v3, %v1509_v4  ;;  %v1514_v3 = vadd.f32 %v4542_v38, %v4430_v26 }
 0x1ef   : > { %v1977_v57 = vadd.f32 %v1902_v12, %v1768_v17  ;;  %v1976_v36 = vadd.f32 %v1900_v40, %v1767_v43  ;;  %2551 = vrot.lane.b32.xlu0 %v2120_v44, %s3498_s20 }
 0x1f0   : > { %v1975_v10 = vadd.f32 %v1898_v1, %v1766_v35 }
 0x1f1   : > { %v2125_v37 = vcombine.low %v1973_v22, %v1977_v57  ;;  %v2126_v14 = vcombine.high %v1973_v22, %v1977_v57 }
 0x1f2   : > { %v1695_v11 = vpop.permute.xlu0 %1694  ;;  %v1697_v25 = vpop.permute.xlu1 %1696 }
 0x1f3   : > { %2559 = vrot.lane.b32.xlu0 %v2121_v5, %s3499_s24  ;;  %v1769_v18 = vadd.f32 %v1695_v11, %v1512_v39  ;;  %v1770_v2 = vadd.f32 %v1697_v25, %v1513_v46  ;;  %v4790_v5 = vrot.slane %v2125_v37, %v4581_v45  ;;  %v4793_v1 = vrot.slane %v2126_v14, %v4581_v45 }
 0x1f6   : > { %v1904_v44 = vpop.permute.xlu0 %1903  ;;  %v1906_v43 = vpop.permute.xlu1 %1905 }
 0x1f7   : > { %v1978_v55 = vadd.f32 %v1904_v44, %v1769_v18  ;;  %v1979_v62 = vadd.f32 %v1906_v43, %v1770_v2  ;;  %2567 = vrot.lane.b32.xlu0 %v2122_v54, %s3500_s25 }
 0x1f9   : > { %v2397_v51 = vcombine.low %v4708_v60, %v1978_v55  ;;  %v2398_v53 = vcombine.high %v4708_v60, %v1978_v55  ;;  %v2141_v17 = vcombine.low %v1975_v10, %v1979_v62  ;;  %v2142_v28 = vcombine.high %v1975_v10, %v1979_v62 }
 0x1fa   : > { %v1701_v12 = vpop.permute.xlu0 %1700  ;;  %v1699_v22 = vpop.permute.xlu1 %1698  ;;  %v1515_v62 = vadd.f32 %v4542_v38, %v4451_v34 }
 0x1fb   : > { %v4796_v40 = vrot.slane %v2141_v17, %v4581_v45  ;;  %v4799_v54 = vrot.slane %v2142_v28, %v4581_v45  ;;  %2575 = vrot.lane.b32.xlu0 %v2123_v59, %s3501_s26  ;;  %v1771_v60 = vadd.f32 %v1699_v22, %v1514_v3  ;;  %v4815_v35 = vrot.slane %v2397_v51, %v4581_v45 }
 0x1fc   : > { %v4818_v2 = vrot.slane %v2398_v53, %v4581_v45  ;;  %v1519_v53 = vadd.f32 %v4542_v38, %v4498_v33  ;;  %v1772_v17 = vadd.f32 %v1701_v12, %v1515_v62 }
 0x1fd   : > { %v2189_v57 = vcombine.low %v4790_v5, %v4796_v40  ;;  %v2190_v26 = vcombine.high %v4790_v5, %v4796_v40  ;;  %v2205_v37 = vcombine.low %v4793_v1, %v4799_v54  ;;  %v2206_v14 = vcombine.high %v4793_v1, %v4799_v54 }
 0x1fe   : > { %v1910_v11 = vpop.permute.xlu0 %1909  ;;  %v1908_v39 = vpop.permute.xlu1 %1907 }
 0x1ff   : > { %v1980_v25 = vadd.f32 %v1908_v39, %v1771_v60  ;;  %2583 = vrot.lane.b32.xlu0 %v2124_v27, %s3502_s27  ;;  %v1981_v3 = vadd.f32 %v1910_v11, %v1772_v17  ;;  %v1516_v60 = vadd.f32 %v4542_v38, %v4460_v49  ;;  %v1517_v11 = vadd.f32 %v4542_v38, %v4486_v23 }
 0x200   : > { %v1521_v39 = vadd.f32 %v4542_v38, %v4531_v20 }
 0x201   : > { %v2413_v59 = vcombine.low %v1976_v36, %v1980_v25  ;;  %v2414_v4 = vcombine.high %v1976_v36, %v1980_v25 }
 0x202   : > { %v1703_v46 = vpop.permute.xlu0 %1702  ;;  %v1705_v18 = vpop.permute.xlu1 %1704 }
 0x203   : > { %v4821_v44 = vrot.slane %v2413_v59, %v4581_v45  ;;  %v4824_v55 = vrot.slane %v2414_v4, %v4581_v45  ;;  %2591 = vrot.lane.b32.xlu0 %v2389_v30, %s3503_s28  ;;  %v1773_v24 = vadd.f32 %v1703_v46, %v1516_v60  ;;  %v1518_v46 = vadd.f32 %v4542_v38, %v4479_v42 }
 0x205   : > { %v2461_v13 = vcombine.low %v4815_v35, %v4821_v44  ;;  %v2462_v50 = vcombine.high %v4815_v35, %v4821_v44  ;;  %v2477_v27 = vcombine.low %v4818_v2, %v4824_v55  ;;  %v2478_v36 = vcombine.high %v4818_v2, %v4824_v55 }
 0x206   : > { %v1912_v43 = vpop.permute.xlu0 %1911  ;;  %v1914_v10 = vpop.permute.xlu1 %1913 }
 0x207   : > { %2599 = vrot.lane.b32.xlu0 %v2390_v8, %s3504_s29  ;;  %v1982_v59 = vadd.f32 %v1912_v43, %v1773_v24  ;;  %v1522_v43 = vadd.f32 %v4542_v38, %v4525_v16  ;;  %v2492_v35 = vrot.slane %v2478_v36, %v4640_v0 }
 0x20a   : > { %v1709_v30 = vpop.permute.xlu0 %1708  ;;  %v1707_v51 = vpop.permute.xlu1 %1706 }
 0x20b   : > { %2607 = vrot.lane.b32.xlu0 %v2391_v32, %s3505_s30  ;;  %v1776_v28 = vadd.f32 %v1709_v30, %v1519_v53  ;;  %v1520_v32 = vadd.f32 %v4542_v38, %v4506_v41  ;;  %v1775_v21 = vadd.f32 %v1707_v51, %v1518_v46 }
 0x20e   : > { %v1918_v22 = vpop.permute.xlu0 %1917  ;;  %v1916_v7 = vpop.permute.xlu1 %1915 }
 0x20f   : > { %v1985_v61 = vadd.f32 %v1918_v22, %v1776_v28  ;;  %2615 = vrot.lane.b32.xlu0 %v2392_v56, %s3506_s4  ;;  %v1774_v56 = vadd.f32 %v1705_v18, %v1517_v11  ;;  %v1984_v16 = vadd.f32 %v1916_v7, %v1775_v21 }
 0x211   : > { %v2157_v34 = vcombine.low %v1981_v3, %v1985_v61  ;;  %v2158_v33 = vcombine.high %v1981_v3, %v1985_v61  ;;  %v1983_v30 = vadd.f32 %v1914_v10, %v1774_v56 }
 0x212   : > { %v1711_v8 = vpop.permute.xlu0 %1710  ;;  %v1713_v12 = vpop.permute.xlu1 %1712 }
 0x213   : > { %2623 = vrot.lane.b32.xlu0 %v2393_v19, %s3507_s5  ;;  %v1777_v15 = vadd.f32 %v1711_v8, %v1520_v32  ;;  %v1778_v49 = vadd.f32 %v1713_v12, %v1521_v39  ;;  %v2165_v10 = vrot.slane %v2157_v34, %v4581_v45  ;;  %v2172_v17 = vrot.slane %v2158_v33, %v4581_v45 }
 0x214   : > { %v4886_v34 = vrot.slane %v2189_v57, %v4640_v0  ;;  %v2204_v33 = vrot.slane %v2190_v26, %v4640_v0  ;;  %v2220_v26 = vrot.slane %v2206_v14, %v4640_v0 }
 0x216   : > { %v1920_v25 = vpop.permute.xlu0 %1919  ;;  %v1922_v4 = vpop.permute.xlu1 %1921 }
 0x217   : > { %v1986_v41 = vadd.f32 %v1920_v25, %v1777_v15  ;;  %v1987_v62 = vadd.f32 %v1922_v4, %v1778_v49  ;;  %2631 = vrot.lane.b32.xlu0 %v2394_v52, %s3508_s6 }
 0x219   : > { %v2429_v23 = vcombine.low %v1982_v59, %v1986_v41  ;;  %v2430_v20 = vcombine.high %v1982_v59, %v1986_v41  ;;  %v2173_v53 = vcombine.low %v1983_v30, %v1987_v62  ;;  %v2174_v19 = vcombine.high %v1983_v30, %v1987_v62 }
 0x21a   : > { %v1715_v18 = vpop.permute.xlu1 %1714  ;;  %v2469_v59 = vrot.slane %v2461_v13, %v4640_v0  ;;  %v2485_v13 = vrot.slane %v2477_v27, %v4640_v0 }
 0x21b   : > { %v2181_v28 = vrot.slane %v2173_v53, %v4581_v45  ;;  %v2188_v47 = vrot.slane %v2174_v19, %v4581_v45  ;;  %2639 = vrot.lane.b32.xlu0 %v2395_v48, %s3493_s9  ;;  %v1779_v52 = vadd.f32 %v1715_v18, %v1522_v43  ;;  %v2213_v48 = vrot.slane %v2205_v37, %v4640_v0 }
 0x21c   : > { %v2437_v5 = vrot.slane %v2429_v23, %v4581_v45  ;;  %v2444_v40 = vrot.slane %v2430_v20, %v4581_v45 }
 0x21d   : > { %v2221_v42 = vcombine.low %v2165_v10, %v2181_v28  ;;  %v2222_v22 = vcombine.high %v2165_v10, %v2181_v28  ;;  %v2237_v3 = vcombine.low %v2172_v17, %v2188_v47  ;;  %v2238_v61 = vcombine.high %v2172_v17, %v2188_v47 }
 0x21e   : > { %v1924_v38 = vpop.permute.xlu1 %1923 }
 0x21f   : > { %v1988_v51 = vadd.f32 %v1924_v38, %v1779_v52  ;;  %2647 = vrot.lane.b32.xlu0 %v2396_v63, %s3492_s8  ;;  %v4901_v7 = vrot.slane %v2221_v42, %v4640_v0  ;;  %v2236_v57 = vrot.slane %v2222_v22, %v4640_v0  ;;  %v2245_v8 = vrot.slane %v2237_v3, %v4640_v0 }
 0x220   : > { %v2252_v37 = vrot.slane %v2238_v61, %v4640_v0 }
 0x221   : > { %v2445_v29 = vcombine.low %v1984_v16, %v1988_v51  ;;  %v2446_v31 = vcombine.high %v1984_v16, %v1988_v51  ;;  %v2254_v63 = vcombine.high %v4886_v34, %v4901_v7  ;;  %v2255_v60 = vcombine.low %v2204_v33, %v2236_v57 }
 0x222   : > { %v2256_v32 = vcombine.high %v2204_v33, %v2236_v57  ;;  %v2257_v12 = vcombine.low %v2213_v48, %v2245_v8  ;;  %v2258_v11 = vcombine.high %v2213_v48, %v2245_v8  ;;  %v2259_v39 = vcombine.low %v2220_v26, %v2252_v37 }
 0x223   : > { %v2453_v24 = vrot.slane %v2445_v29, %v4581_v45  ;;  %v2460_v15 = vrot.slane %v2446_v31, %v4581_v45  ;;  %2537 = vrot.lane.b32.xlu1 %v2254_v63, %s3496_s17  ;;  %v2260_v1 = vcombine.high %v2220_v26, %v2252_v37  ;;  %v2253_v54 = vcombine.low %v4886_v34, %v4901_v7 }
 0x224   : > { %v2476_v45 = vrot.slane %v2462_v50, %v4640_v0 }
 0x225   : > { %v2493_v14 = vcombine.low %v2437_v5, %v2453_v24  ;;  %v2494_v56 = vcombine.high %v2437_v5, %v2453_v24  ;;  %v2509_v49 = vcombine.low %v2444_v40, %v2460_v15  ;;  %v2510_v25 = vcombine.high %v2444_v40, %v2460_v15 }
 0x227   : > { %2545 = vrot.lane.b32.xlu1 %v2255_v60, %s3497_s19  ;;  %v2501_v41 = vrot.slane %v2493_v14, %v4640_v0  ;;  %v2508_v4 = vrot.slane %v2494_v56, %v4640_v0  ;;  %v2517_v30 = vrot.slane %v2509_v49, %v4640_v0  ;;  %v2524_v62 = vrot.slane %v2510_v25, %v4640_v0 }
 0x229   : > { %v2525_v44 = vcombine.low %v2469_v59, %v2501_v41  ;;  %v2526_v50 = vcombine.high %v2469_v59, %v2501_v41  ;;  %v2527_v23 = vcombine.low %v2476_v45, %v2508_v4  ;;  %v2528_v20 = vcombine.high %v2476_v45, %v2508_v4 }
 0x22a   : > { %v2529_v53 = vcombine.low %v2485_v13, %v2517_v30  ;;  %v2530_v19 = vcombine.high %v2485_v13, %v2517_v30  ;;  %v2531_v46 = vcombine.low %v2492_v35, %v2524_v62  ;;  %v2532_v18 = vcombine.high %v2492_v35, %v2524_v62 }
 0x22b   : > { %2553 = vrot.lane.b32.xlu1 %v2256_v32, %s3498_s20 }
 0x22f   : > { %2561 = vrot.lane.b32.xlu1 %v2257_v12, %s3499_s24  ;;  %s5001_s24 = scalar_lea.hbm %s5051_s3, %s2955_s11 }
 0x233   : > { %2569 = vrot.lane.b32.xlu1 %v2258_v11, %s3500_s25 }
 0x237   : > { %2577 = vrot.lane.b32.xlu1 %v2259_v39, %s3501_s26  ;;  %s3509_s26 = smov [#allocation2]  }
 0x23b   : > { %2585 = vrot.lane.b32.xlu1 %v2260_v1, %s3502_s27  ;;  %s3434_s27 = sshll.u32 %s3509_s26, 4  ;;  %s3435_s27 = int_to_ptr.vmem [resolvable:$false] %s3434_s27 }
 0x23f   : > { %2593 = vrot.lane.b32.xlu1 %v2525_v44, %s3503_s28  ;;  %s3436_s28 = scalar_lea.vmem %s3435_s27, 512 }
 0x243   : > { %2601 = vrot.lane.b32.xlu1 %v2526_v50, %s3504_s29 }
 0x247   : > { %2609 = vrot.lane.b32.xlu1 %v2527_v23, %s3505_s30 }
 0x24b   : > { %2617 = vrot.lane.b32.xlu1 %v2528_v20, %s3506_s4 }
 0x24f   : > { %2625 = vrot.lane.b32.xlu1 %v2529_v53, %s3507_s5 }
 0x253   : > { %2633 = vrot.lane.b32.xlu1 %v2530_v19, %s3508_s6 }
 0x257   : > { %2641 = vrot.lane.b32.xlu1 %v2531_v46, %s3493_s9 }
 0x259   : > { %v2536_v0 = vpop.permute.xlu0 %2535 }
 0x25a   : > { %v2654_v52 = vsel %vm2653_vm4, %v2117_v58, %v2536_v0 }
 0x25b   : > { %2649 = vrot.lane.b32.xlu1 %v2532_v18, %s3492_s8  ;;  %s2780_s8 = sshll.u32 %s161_s7, 4 }
 0x25c   : > { %s4974_s9 = scalar_lea.vmem [#allocation2], %s2780_s8 }
 0x25d   : > { %v2544_v2 = vpop.permute.xlu0 %2543  ;;  %s2714_s10 = sshll.u32 %s4974_s9, 4  ;;  %s4994_s10 = int_to_ptr.vmem [resolvable:$true] %s2714_s10 }
 0x25e   : > { %v2657_v42 = vsel %vm2656_vm5, %v2654_v52, %v2544_v2  ;;  %s3430_s25 = scalar_lea.vmem %s4994_s10, 256  ;;  %p3437_p0 = scmp.lt.s32.totalorder %s4994_s10, %s3435_s27 }
 0x25f   : > { %p3431_p11 = scmp.ne.s32.totalorder %s4994_s10, %s3430_s25  ;;  %p3438_p1 = scmp.lt.s32.totalorder %s3436_s28, %s3430_s25 }
 0x261   : > { %v2552_v55 = vpop.permute.xlu0 %2551  ;;  %p3432_p12 = pnand %p3431_p11, %p3569_p5  ;;  %p3439_p2 = por %p3438_p1, %p3437_p0 }
 0x262   : > { %v2660_v3 = vsel %vm2659_vm6, %v2657_v42, %v2552_v55 }
 0x263   : > { %p3433_p13 = pneg %p3432_p12 }
 0x265   : > { %v2560_v27 = vpop.permute.xlu0 %2559  ;;  %p3440_p3 = pnand %p3439_p2, %p3433_p13 }
 0x266   : > { %v2663_v61 = vsel %vm2662_vm7, %v2660_v3, %v2560_v27 }
 0x269   : > { %v2568_v36 = vpop.permute.xlu0 %2567 }
 0x26a   : > { %v2666_v16 = vsel %vm2665_vm8, %v2663_v61, %v2568_v36 }
 0x26d   : > { %v2576_v43 = vpop.permute.xlu0 %2575 }
 0x26e   : > { %v2669_v9 = vsel %vm2668_vm9, %v2666_v16, %v2576_v43 }
 0x271   : > { %v2584_v10 = vpop.permute.xlu0 %2583 }
 0x272   : > { %v2672_v58 = vsel %vm2671_vm10, %v2669_v9, %v2584_v10 }
 0x275   : > { %v2592_v17 = vpop.permute.xlu0 %2591 }
 0x276   : > { %v2675_v38 = vsel %vm2674_vm11, %v2672_v58, %v2592_v17 }
 0x279   : > { %v2600_v28 = vpop.permute.xlu0 %2599 }
 0x27a   : > { %v2678_v33 = vsel %vm2677_vm12, %v2675_v38, %v2600_v28 }
 0x27d   : > { %v2608_v47 = vpop.permute.xlu0 %2607 }
 0x27e   : > { %v2681_v48 = vsel %vm2680_vm13, %v2678_v33, %v2608_v47 }
 0x281   : > { %v2616_v21 = vpop.permute.xlu0 %2615 }
 0x282   : > { %v2684_v57 = vsel %vm2683_vm14, %v2681_v48, %v2616_v21 }
 0x285   : > { %v2624_v22 = vpop.permute.xlu0 %2623 }
 0x286   : > { %v2687_v8 = vsel %vm2686_vm15, %v2684_v57, %v2624_v22 }
 0x289   : > { %v2632_v6 = vpop.permute.xlu0 %2631 }
 0x28a   : > { %v2690_v5 = vsel %vm2689_vm0, %v2687_v8, %v2632_v6 }
 0x28d   : > { %v2640_v51 = vpop.permute.xlu0 %2639 }
 0x28e   : > { %v2693_v40 = vsel %vm2692_vm1, %v2690_v5, %v2640_v51 }
 0x291   : > { %v2648_v26 = vpop.permute.xlu0 %2647 }
 0x292   : > { %v2696_v37 = vsel %vm2695_vm2, %v2693_v40, %v2648_v26 }
 0x293   : > { %2698 = vst [vmem:[%s4974_s9] sm:$0xff] %v2696_v37 }
 0x295   : > { %v2538_v29 = vpop.permute.xlu1 %2537 }
 0x296   : > { %v2655_v14 = vsel %vm2653_vm4, %v2253_v54, %v2538_v29 }
 0x299   : > { %v2546_v31 = vpop.permute.xlu1 %2545 }
 0x29a   : > { %v2658_v56 = vsel %vm2656_vm5, %v2655_v14, %v2546_v31 }
 0x29d   : > { %v2554_v63 = vpop.permute.xlu1 %2553 }
 0x29e   : > { %v2661_v25 = vsel %vm2659_vm6, %v2658_v56, %v2554_v63 }
 0x2a1   : > { %v2562_v60 = vpop.permute.xlu1 %2561 }
 0x2a2   : > { %v2664_v59 = vsel %vm2662_vm7, %v2661_v25, %v2562_v60 }
 0x2a5   : > { %v2570_v32 = vpop.permute.xlu1 %2569 }
 0x2a6   : > { %v2667_v45 = vsel %vm2665_vm8, %v2664_v59, %v2570_v32 }
 0x2a9   : > { %v2578_v12 = vpop.permute.xlu1 %2577 }
 0x2aa   : > { %v2670_v41 = vsel %vm2668_vm9, %v2667_v45, %v2578_v12 }
 0x2ad   : > { %v2586_v11 = vpop.permute.xlu1 %2585 }
 0x2ae   : > { %v2673_v30 = vsel %vm2671_vm10, %v2670_v41, %v2586_v11 }
 0x2b1   : > { %v2594_v39 = vpop.permute.xlu1 %2593 }
 0x2b2   : > { %v2676_v34 = vsel %vm2674_vm11, %v2673_v30, %v2594_v39 }
 0x2b5   : > { %v2602_v24 = vpop.permute.xlu1 %2601 }
 0x2b6   : > { %v2679_v7 = vsel %vm2677_vm12, %v2676_v34, %v2602_v24 }
 0x2b9   : > { %v2610_v15 = vpop.permute.xlu1 %2609 }
 0x2ba   : > { %v2682_v54 = vsel %vm2680_vm13, %v2679_v7, %v2610_v15 }
 0x2bd   : > { %v2618_v1 = vpop.permute.xlu1 %2617 }
 0x2be   : > { %v2685_v13 = vsel %vm2683_vm14, %v2682_v54, %v2618_v1 }
 0x2c1   : > { %v2626_v49 = vpop.permute.xlu1 %2625 }
 0x2c2   : > { %v2688_v35 = vsel %vm2686_vm15, %v2685_v13, %v2626_v49 }
 0x2c5   : > { %v2634_v4 = vpop.permute.xlu1 %2633 }
 0x2c6   : > { %v2691_v44 = vsel %vm2689_vm0, %v2688_v35, %v2634_v4 }
 0x2c9   : > { %v2642_v62 = vpop.permute.xlu1 %2641 }
 0x2ca   : > { %v2694_v50 = vsel %vm2692_vm1, %v2691_v44, %v2642_v62 }
 0x2cd   : > { %v2650_v23 = vpop.permute.xlu1 %2649 }
 0x2ce   : > { %v2697_v20 = vsel %vm2695_vm2, %v2694_v50, %v2650_v23 }
 0x2cf   : > { %2699 = vst [vmem:[%s4974_s9 + $0x8] sm:$0xff] %v2697_v20 }
 0x2d0   : > { %3443 = shalt.err (!%p3440_p3)
}
 0x2d1   : > { %s3444_s29 = scalar_lea.hbm %s5001_s24, 256  ;;  %s3448_s5 = scalar_lea.hbm %s5051_s3, 512 }
 0x2d2   : > { %p3445_p4 = scmp.ne.s32.totalorder %s5001_s24, %s3444_s29  ;;  %p3449_p9 = scmp.lt.s32.totalorder %s5001_s24, %s5051_s3 }
 0x2d3   : > { %p3450_p10 = scmp.lt.s32.totalorder %s3448_s5, %s3444_s29 }
 0x2d4   : > { %p3446_p7 = pnand %p3445_p4, %p3569_p5 }
 0x2d5   : > { %p3451_p11 = por %p3450_p10, %p3449_p9 }
 0x2d6   : > { %p3447_p8 = pneg %p3446_p7 }
 0x2d8   : > { %p3452_p12 = pnand %p3451_p11, %p3447_p8 }
 0x2da   : > { %3455 = shalt.err (!%p3452_p12)
}
 0x2db   : > { %s3510_s8 = smov 128  }
 0x2dc   : > { %3373 = dma.vmem_to_hbm [thread:$0]  (%p3569_p5), %s4994_s10, 256, %s5001_s24, %s5007_s16, %s3510_s8, %s3510_s8, %s3496_s17  }
 0x2dd PF: > { %p3379_p13 = scmp.ge.s32.totalorder %s3490_s15, 2  ;;  %s2729_s9 = sand.u32 1, %s3478_s12  }
 0x2de   : > { %s2730_s11 = scalar_lea.sflag [#allocation3], %s2729_s9 }
 0x2df   : > { %p3376_p0 = pnand %p3379_p13, %p3573_p6 }
 0x2e1   : > { %p3377_p1 = pneg %p3376_p0 }
 0x2e3   : > { %3473 = dma.done.wait (%p3377_p1), %s2730_s11, 256  }
 0x2e4   : > { %3475 = vsyncadd (%p3377_p1), %s2730_s11, 4294967040  ;;  %p13_p2 = scmp.ge.s32.totalorder %s3556_s18, 4   ;;  %s5087_s12 = smov %s3482_s13 }
 0x2e5   : > { %s5088_s13 = smov %s3486_s14  ;;  %s5089_s14 = smov %s3567_s21 }
 0x2e6   : > { %s5090_s15 = smov %s3556_s18  ;;  %15 = sbr.rel (!%p13_p2) target bundleno = 3 (0x3), region = 69 }
 0x2eb   :  { %2735 = vsyncpa [#allocation3], 1 }
 0x2ec   :  { %2737 = vsyncpa [#allocation3 + $0x1], 1 }

</bundles_post_ra>
